<compile_context>
chip_gen: v7x
topology: tpu7x:2x2x1
jax: 0.10.0
libtpu: 0.0.40
codegen_flags: <defaults>
</compile_context>

<pallas_src>
import numpy as np
import jax
import jax.numpy as jnp
from jax.experimental import pallas as pl


# ---------------------------------------------------------------------------
# Configuration (small synthetic shapes consistent with the module)
# ---------------------------------------------------------------------------
N = 2          # batch
IN_C = 3       # input image channels
HX = WX = 16   # input image spatial size (final output size)
C2_CH = 8      # c2 (low level) channels
H2 = W2 = 8    # c2 spatial size
C5_CH = 16     # c5 (high level) channels
H5 = W5 = 4    # c5 spatial size
INTER = 8      # inter_channels
CLASSES = 4    # number of classes
HO, WO = H5 - 2, W5 - 2   # cbr output (3x3 conv, padding=0, stride=1)


# ---------------------------------------------------------------------------
# Bilinear (align_corners=True) 1-D interpolation matrices (host constants)
# ---------------------------------------------------------------------------
def _bilinear_matrix(out_size, in_size):
    scale = (in_size - 1) / (out_size - 1) if out_size > 1 else 0.0
    src = np.arange(out_size) * scale
    i0 = np.clip(np.floor(src).astype(np.int64), 0, in_size - 1)
    i1 = np.minimum(i0 + 1, in_size - 1)
    frac = src - i0
    r = np.zeros((out_size, in_size), np.float64)
    r[np.arange(out_size), i0] += 1.0 - frac
    r[np.arange(out_size), i1] += frac
    return r.astype(np.float32)


_RH = _bilinear_matrix(H2, HO)     # (H2, HO)
_RW = _bilinear_matrix(W2, WO)     # (W2, WO)
_RH2 = _bilinear_matrix(HX, H2)    # (HX, H2)
_RW2 = _bilinear_matrix(WX, W2)    # (WX, W2)
# block-averaging matrix: per-batch global average pool as a single matmul
_AVG = np.kron(np.eye(N, dtype=np.float32),
               np.full((1, H5 * W5), 1.0 / (H5 * W5), np.float32)).astype(np.float32)


# ---------------------------------------------------------------------------
# Fused Pallas kernel: cbr + scale + scale-mul + classifiers + both upsamples
# ---------------------------------------------------------------------------
def _lraspp_head_kernel(p_ref, c5_ref, avg_ref, c2_ref,
                        wcbr_ref, bcbr_ref, wsc_ref, wc5t_ref, wc2t_ref,
                        rwt_ref, rh_ref, rw2t_ref, rh2_ref, out_ref):
    f32 = jnp.float32

    # ---- cbr: 3x3 valid conv as one im2col matmul + folded-BN bias + ReLU --
    x = jnp.dot(p_ref[...], wcbr_ref[...], preferred_element_type=f32)
    x = jnp.maximum(x + bcbr_ref[...], 0.0)             # (N*HO*WO, INTER)

    # ---- scale: global avg pool (matmul) + 1x1 conv + sigmoid --------------
    m = jnp.dot(avg_ref[...], c5_ref[...], preferred_element_type=f32)       # (N, C5)
    s = jax.nn.sigmoid(jnp.dot(m, wsc_ref[...], preferred_element_type=f32))  # (N, F)

    # ---- x * s, then c5 classifier (1x1) commuted ahead of the upsample ----
    x3 = x.reshape(N, HO * WO, INTER) * s[:, None, :]    # (N, HO*WO, F)
    wc5_b = jnp.broadcast_to(wc5t_ref[...], (N, CLASSES, INTER))
    z = jax.lax.dot_general(wc5_b, x3, (((2,), (2,)), ((0,), (0,))),
                            preferred_element_type=f32)  # (N, K, HO*WO)

    # ---- first bilinear upsample (HO,WO)->(H2,W2), separable ---------------
    # W pass as a dense right-matmul; H pass as an unrolled MAC (HO == 2).
    up = jnp.zeros((N, H2, CLASSES, W2), f32)
    for h in range(HO):
        z_h = z[:, :, h * WO:(h + 1) * WO].reshape(N * CLASSES, WO)
        u_h = jnp.dot(z_h, rwt_ref[...], preferred_element_type=f32)  # (N*K, W2)
        u_h = u_h.reshape(N, CLASSES, W2)
        up = up + u_h[:, None, :, :] * rh_ref[h]         # rh_ref[h]: (H2, 1, 1)

    # ---- low-level (c2) 1x1 classifier, batched over (n, row) --------------
    c2r = c2_ref[...].reshape(N * H2, C2_CH, W2)         # (N*H2, C2, W2)
    wc2_b = jnp.broadcast_to(wc2t_ref[...], (N * H2, CLASSES, C2_CH))
    low = jax.lax.dot_general(wc2_b, c2r, (((2,), (1,)), ((0,), (0,))),
                              preferred_element_type=f32)  # (N*H2, K, W2)
    head = up + low.reshape(N, H2, CLASSES, W2)          # (N, H2, K, W2)

    # ---- final bilinear upsample (H2,W2)->(HX,WX), separable ---------------
    a1 = jnp.dot(head.reshape(N * H2 * CLASSES, W2), rw2t_ref[...],
                 preferred_element_type=f32)             # (N*H2*K, WX)
    a1 = a1.reshape(N, H2, CLASSES, WX)
    out = jnp.zeros((N, HX, CLASSES, WX), f32)
    for p in range(H2):
        out = out + a1[:, p:p + 1, :, :] * rh2_ref[p]    # rh2_ref[p]: (HX, 1, 1)
    out_ref[...] = out                                   # (N, HX, K, WX)


# ---------------------------------------------------------------------------
# Wrapper (layout prep + single pallas_call)
# ---------------------------------------------------------------------------
@jax.jit
def lraspp_head_forward(c2, c5, params):
    """c2: (N,H2,W2,C2) NHWC, c5: (N,H5,W5,C5) NHWC -> (N, CLASSES, HX, WX)."""
    # im2col of c5 for the 3x3 valid conv (pure layout, fused by XLA)
    cols = [c5[:, dy:dy + HO, dx:dx + WO, :] for dy in range(3) for dx in range(3)]
    patches = jnp.concatenate(cols, axis=-1).reshape(N * HO * WO, 9 * C5_CH)
    c5_flat = c5.reshape(N * H5 * W5, C5_CH)
    c2_r = jnp.transpose(c2, (0, 1, 3, 2))               # (N, H2, C2, W2)

    w_cbr_mat = params["w_cbr"].reshape(9 * C5_CH, INTER)
    b_cbr = params["b_cbr"].reshape(1, INTER)
    w_scale = params["w_scale"]                          # (C5, INTER)
    w_c5t = params["w_c5"].T                             # (K, INTER)
    w_c2t = params["w_c2"].T                             # (K, C2)

    rw_t = jnp.asarray(_RW.T)                            # (WO, W2)
    rh_e = jnp.asarray(_RH.T).reshape(HO, H2, 1, 1)
    rw2_t = jnp.asarray(_RW2.T)                          # (W2, WX)
    rh2_e = jnp.asarray(_RH2.T).reshape(H2, HX, 1, 1)
    avg_mat = jnp.asarray(_AVG)                          # (N, N*H5*W5)

    flops = 2 * (N * HO * WO * 9 * C5_CH * INTER          # cbr im2col matmul
                 + N * (N * H5 * W5) * C5_CH              # avg-pool matmul
                 + N * C5_CH * INTER                      # scale 1x1
                 + N * CLASSES * INTER * HO * WO          # c5 classifier
                 + HO * N * CLASSES * WO * W2             # first W pass
                 + HO * N * H2 * CLASSES * W2             # first H pass (MAC)
                 + N * H2 * CLASSES * C2_CH * W2          # c2 classifier
                 + N * H2 * CLASSES * W2 * WX             # final W pass
                 + H2 * N * HX * CLASSES * WX)            # final H pass (MAC)
    bytes_accessed = 4 * (patches.size + c5_flat.size + avg_mat.size + c2_r.size
                          + w_cbr_mat.size + b_cbr.size + w_scale.size
                          + w_c5t.size + w_c2t.size + rw_t.size + rh_e.size
                          + rw2_t.size + rh2_e.size + N * HX * CLASSES * WX)

    out = pl.pallas_call(
        _lraspp_head_kernel,
        out_shape=jax.ShapeDtypeStruct((N, HX, CLASSES, WX), jnp.float32),
        cost_estimate=pl.CostEstimate(flops=flops,
                                      transcendentals=N * INTER,
                                      bytes_accessed=bytes_accessed),
    )(patches, c5_flat, avg_mat, c2_r, w_cbr_mat, b_cbr, w_scale,
      w_c5t, w_c2t, rw_t, rh_e, rw2_t, rh2_e)

    return jnp.transpose(out, (0, 2, 1, 3))              # NCHW (N, K, HX, WX)


# ---------------------------------------------------------------------------
# Pure-JAX reference mirroring the PyTorch module order (for verification)
# ---------------------------------------------------------------------------
def ref_forward(c2, c5, p):
    rh, rw, rh2, rw2 = map(jnp.asarray, (_RH, _RW, _RH2, _RW2))
    conv = jnp.zeros((N, HO, WO, INTER), jnp.float32)
    for dy in range(3):
        for dx in range(3):
            conv = conv + jnp.einsum('nhwc,cf->nhwf',
                                     c5[:, dy:dy + HO, dx:dx + WO, :],
                                     p["w_cbr"][dy, dx])
    x = jnp.maximum(conv + p["b_cbr"].reshape(1, 1, 1, INTER), 0.0)
    s = jax.nn.sigmoid(jnp.einsum('nc,cf->nf',
                                  jnp.mean(c5, axis=(1, 2)), p["w_scale"]))
    xs = x * s[:, None, None, :]
    up = jnp.einsum('ph,nhwf->npwf', rh, xs)
    up = jnp.einsum('qw,npwf->npqf', rw, up)
    head = (jnp.einsum('npqf,fk->npqk', up, p["w_c5"])
            + jnp.einsum('npqc,ck->npqk', c2, p["w_c2"]))
    fin = jnp.einsum('ap,npqk->naqk', rh2, head)
    fin = jnp.einsum('bq,naqk->nabk', rw2, fin)
    return jnp.transpose(fin, (0, 3, 1, 2))              # NCHW


# ---------------------------------------------------------------------------
# Main
# ---------------------------------------------------------------------------
if __name__ == "__main__":
    key = jax.random.PRNGKey(0)
    kx, k1, k2, k3, k4, k5, k6 = jax.random.split(key, 7)

    # ---- parameters (shapes from LRASPPHead.__init__), BN folded (eval) ----
    w_cbr_raw = jax.random.normal(k1, (3, 3, C5_CH, INTER), jnp.float32) * 0.1
    gamma = 1.0 + 0.05 * jnp.arange(INTER, dtype=jnp.float32)
    beta = 0.02 * jnp.arange(INTER, dtype=jnp.float32)
    run_mean = 0.01 * jnp.arange(INTER, dtype=jnp.float32)
    run_var = 1.0 + 0.03 * jnp.arange(INTER, dtype=jnp.float32)
    bn_scale = gamma / jnp.sqrt(run_var + 1e-5)
    w_cbr = w_cbr_raw * bn_scale[None, None, None, :]
    b_cbr = (beta - run_mean * bn_scale).reshape(1, INTER)

    w_scale = jax.random.normal(k2, (C5_CH, INTER), jnp.float32) * 0.1
    w_c2 = jax.random.normal(k3, (C2_CH, CLASSES), jnp.float32) * 0.1
    w_c5 = jax.random.normal(k4, (INTER, CLASSES), jnp.float32) * 0.1
    params = dict(w_cbr=w_cbr, b_cbr=b_cbr, w_scale=w_scale,
                  w_c2=w_c2, w_c5=w_c5)

    # ---- input image (PyTorch NCHW convention) -----------------------------
    x_nchw = jax.random.normal(kx, (N, IN_C, HX, WX), jnp.float32)
    x_nhwc = jnp.transpose(x_nchw, (0, 2, 3, 1))

    # ---- backbone stand-in (glue, plain JAX) --------------------------------
    w_bb2 = jax.random.normal(k5, (IN_C, C2_CH), jnp.float32) * 0.5
    w_bb5 = jax.random.normal(k6, (IN_C, C5_CH), jnp.float32) * 0.5
    c2_pool = x_nhwc.reshape(N, H2, HX // H2, W2, WX // W2, IN_C).mean((2, 4))
    c5_pool = x_nhwc.reshape(N, H5, HX // H5, W5, WX // W5, IN_C).mean((2, 4))
    c2 = jnp.einsum('nhwc,cd->nhwd', c2_pool, w_bb2)     # (N, 8, 8, 8)
    c5 = jnp.einsum('nhwc,cd->nhwd', c5_pool, w_bb5)     # (N, 4, 4, 16)

    # ---- run fused Pallas kernel --------------------------------------------
    out_nchw = lraspp_head_forward(c2, c5, params)
    out_nchw = jax.block_until_ready(out_nchw)

    # ---- verify against pure-JAX reference ----------------------------------
    ref = ref_forward(c2, c5, params)
    np.testing.assert_allclose(np.asarray(out_nchw), np.asarray(ref),
                               rtol=1e-4, atol=1e-5)
    assert out_nchw.shape == (N, CLASSES, HX, WX)
    print("KERNEL_OK")
</pallas_src>

<mosaic_0001>
module attributes {stable_mosaic.version = 11 : i64} {
  func.func @_lraspp_head_kernel(%arg0: memref<8x144xf32, #tpu.memory_space<vmem>>, %arg1: memref<32x16xf32, #tpu.memory_space<vmem>>, %arg2: memref<2x32xf32, #tpu.memory_space<vmem>>, %arg3: memref<2x8x8x8xf32, #tpu.memory_space<vmem>>, %arg4: memref<144x8xf32, #tpu.memory_space<vmem>>, %arg5: memref<1x8xf32, #tpu.memory_space<vmem>>, %arg6: memref<16x8xf32, #tpu.memory_space<vmem>>, %arg7: memref<4x8xf32, #tpu.memory_space<vmem>>, %arg8: memref<4x8xf32, #tpu.memory_space<vmem>>, %arg9: memref<2x8xf32, #tpu.memory_space<vmem>>, %arg10: memref<2x8x1x1xf32, #tpu.memory_space<vmem>>, %arg11: memref<8x16xf32, #tpu.memory_space<vmem>>, %arg12: memref<8x16x1x1xf32, #tpu.memory_space<vmem>>, %arg13: memref<2x16x4x16xf32, #tpu.memory_space<vmem>>) attributes {dimension_semantics = [], scalar_prefetch = 0 : i64, scratch_operands = 0 : i64, tpu.core_type = #tpu.core_type<tc>} {
    %c0 = arith.constant 0 : index
    %c0_0 = arith.constant 0 : index
    %0 = vector.load %arg0[%c0, %c0_0] : memref<8x144xf32, #tpu.memory_space<vmem>>, vector<8x144xf32>
    %c0_1 = arith.constant 0 : index
    %c0_2 = arith.constant 0 : index
    %1 = vector.load %arg4[%c0_1, %c0_2] : memref<144x8xf32, #tpu.memory_space<vmem>>, vector<144x8xf32>
    %cst = arith.constant dense<0.000000e+00> : vector<8x8xf32>
    %2 = tpu.matmul %0, %1, %cst {dimension_numbers = #tpu.dot_dimension_numbers<[1], [0], [0], [1], [0, 0, 1, 1], [], []>} : vector<8x144xf32>, vector<144x8xf32>, vector<8x8xf32> -> vector<8x8xf32>
    %c0_3 = arith.constant 0 : index
    %c0_4 = arith.constant 0 : index
    %3 = vector.load %arg5[%c0_3, %c0_4] : memref<1x8xf32, #tpu.memory_space<vmem>>, vector<1x8xf32>
    %4 = vector.broadcast %3 : vector<1x8xf32> to vector<8x8xf32>
    %5 = arith.addf %2, %4 : vector<8x8xf32>
    %cst_5 = arith.constant 0.000000e+00 : f32
    %6 = vector.broadcast %cst_5 : f32 to vector<8x8xf32>
    %7 = arith.maximumf %5, %6 : vector<8x8xf32>
    %c0_6 = arith.constant 0 : index
    %c0_7 = arith.constant 0 : index
    %8 = vector.load %arg2[%c0_6, %c0_7] : memref<2x32xf32, #tpu.memory_space<vmem>>, vector<2x32xf32>
    %c0_8 = arith.constant 0 : index
    %c0_9 = arith.constant 0 : index
    %9 = vector.load %arg1[%c0_8, %c0_9] : memref<32x16xf32, #tpu.memory_space<vmem>>, vector<32x16xf32>
    %cst_10 = arith.constant dense<0.000000e+00> : vector<2x16xf32>
    %10 = tpu.matmul %8, %9, %cst_10 {dimension_numbers = #tpu.dot_dimension_numbers<[1], [0], [0], [1], [0, 0, 1, 1], [], []>} : vector<2x32xf32>, vector<32x16xf32>, vector<2x16xf32> -> vector<2x16xf32>
    %c0_11 = arith.constant 0 : index
    %c0_12 = arith.constant 0 : index
    %11 = vector.load %arg6[%c0_11, %c0_12] : memref<16x8xf32, #tpu.memory_space<vmem>>, vector<16x8xf32>
    %cst_13 = arith.constant dense<0.000000e+00> : vector<2x8xf32>
    %12 = tpu.matmul %10, %11, %cst_13 {dimension_numbers = #tpu.dot_dimension_numbers<[1], [0], [0], [1], [0, 0, 1, 1], [], []>} : vector<2x16xf32>, vector<16x8xf32>, vector<2x8xf32> -> vector<2x8xf32>
    %13 = arith.negf %12 : vector<2x8xf32>
    %14 = math.exp %13 : vector<2x8xf32>
    %cst_14 = arith.constant 1.000000e+00 : f32
    %15 = vector.broadcast %cst_14 : f32 to vector<2x8xf32>
    %16 = arith.addf %15, %14 : vector<2x8xf32>
    %17 = arith.divf %15, %16 : vector<2x8xf32>
    %18 = vector.shape_cast %7 : vector<8x8xf32> to vector<2x4x8xf32>
    %19 = vector.shape_cast %17 : vector<2x8xf32> to vector<2x1x8xf32>
    %20 = vector.broadcast %19 : vector<2x1x8xf32> to vector<2x4x8xf32>
    %21 = arith.mulf %18, %20 : vector<2x4x8xf32>
    %c0_15 = arith.constant 0 : index
    %c0_16 = arith.constant 0 : index
    %22 = vector.load %arg7[%c0_15, %c0_16] : memref<4x8xf32, #tpu.memory_space<vmem>>, vector<4x8xf32>
    %23 = vector.shape_cast %22 : vector<4x8xf32> to vector<1x4x8xf32>
    %24 = vector.broadcast %23 : vector<1x4x8xf32> to vector<2x4x8xf32>
    %cst_17 = arith.constant dense<0.000000e+00> : vector<2x4x4xf32>
    %25 = tpu.matmul %24, %21, %cst_17 {dimension_numbers = #tpu.dot_dimension_numbers<[2], [2], [1], [1], [0, 0, 0, 1, 1, 1], [0], [0]>} : vector<2x4x8xf32>, vector<2x4x8xf32>, vector<2x4x4xf32> -> vector<2x4x4xf32>
    %cst_18 = arith.constant 0.000000e+00 : f32
    %26 = vector.broadcast %cst_18 : f32 to vector<2x8x4x8xf32>
    %27 = vector.extract_strided_slice %25 {offsets = [0, 0, 0], sizes = [2, 4, 2], strides = [1, 1, 1]} : vector<2x4x4xf32> to vector<2x4x2xf32>
    %28 = vector.shape_cast %27 : vector<2x4x2xf32> to vector<8x2xf32>
    %c0_19 = arith.constant 0 : index
    %c0_20 = arith.constant 0 : index
    %29 = vector.load %arg9[%c0_19, %c0_20] : memref<2x8xf32, #tpu.memory_space<vmem>>, vector<2x8xf32>
    %cst_21 = arith.constant dense<0.000000e+00> : vector<8x8xf32>
    %30 = tpu.matmul %28, %29, %cst_21 {dimension_numbers = #tpu.dot_dimension_numbers<[1], [0], [0], [1], [0, 0, 1, 1], [], []>} : vector<8x2xf32>, vector<2x8xf32>, vector<8x8xf32> -> vector<8x8xf32>
    %31 = vector.shape_cast %30 : vector<8x8xf32> to vector<2x4x8xf32>
    %32 = vector.shape_cast %31 : vector<2x4x8xf32> to vector<2x1x4x8xf32>
    %c0_22 = arith.constant 0 : index
    %c0_23 = arith.constant 0 : index
    %c0_24 = arith.constant 0 : index
    %c0_25 = arith.constant 0 : index
    %33 = vector.load %arg10[%c0_22, %c0_23, %c0_24, %c0_25] : memref<2x8x1x1xf32, #tpu.memory_space<vmem>>, vector<1x8x1x1xf32>
    %34 = vector.shape_cast %33 : vector<1x8x1x1xf32> to vector<8x1x1xf32>
    %35 = vector.shape_cast %34 : vector<8x1x1xf32> to vector<1x8x1x1xf32>
    %36 = vector.broadcast %32 : vector<2x1x4x8xf32> to vector<2x8x4x8xf32>
    %37 = vector.broadcast %35 : vector<1x8x1x1xf32> to vector<2x8x4x8xf32>
    %38 = arith.mulf %36, %37 : vector<2x8x4x8xf32>
    %39 = arith.addf %26, %38 : vector<2x8x4x8xf32>
    %40 = vector.extract_strided_slice %25 {offsets = [0, 0, 2], sizes = [2, 4, 2], strides = [1, 1, 1]} : vector<2x4x4xf32> to vector<2x4x2xf32>
    %41 = vector.shape_cast %40 : vector<2x4x2xf32> to vector<8x2xf32>
    %c0_26 = arith.constant 0 : index
    %c0_27 = arith.constant 0 : index
    %42 = vector.load %arg9[%c0_26, %c0_27] : memref<2x8xf32, #tpu.memory_space<vmem>>, vector<2x8xf32>
    %cst_28 = arith.constant dense<0.000000e+00> : vector<8x8xf32>
    %43 = tpu.matmul %41, %42, %cst_28 {dimension_numbers = #tpu.dot_dimension_numbers<[1], [0], [0], [1], [0, 0, 1, 1], [], []>} : vector<8x2xf32>, vector<2x8xf32>, vector<8x8xf32> -> vector<8x8xf32>
    %44 = vector.shape_cast %43 : vector<8x8xf32> to vector<2x4x8xf32>
    %45 = vector.shape_cast %44 : vector<2x4x8xf32> to vector<2x1x4x8xf32>
    %c1 = arith.constant 1 : index
    %c0_29 = arith.constant 0 : index
    %c0_30 = arith.constant 0 : index
    %c0_31 = arith.constant 0 : index
    %46 = vector.load %arg10[%c1, %c0_29, %c0_30, %c0_31] : memref<2x8x1x1xf32, #tpu.memory_space<vmem>>, vector<1x8x1x1xf32>
    %47 = vector.shape_cast %46 : vector<1x8x1x1xf32> to vector<8x1x1xf32>
    %48 = vector.shape_cast %47 : vector<8x1x1xf32> to vector<1x8x1x1xf32>
    %49 = vector.broadcast %45 : vector<2x1x4x8xf32> to vector<2x8x4x8xf32>
    %50 = vector.broadcast %48 : vector<1x8x1x1xf32> to vector<2x8x4x8xf32>
    %51 = arith.mulf %49, %50 : vector<2x8x4x8xf32>
    %52 = arith.addf %39, %51 : vector<2x8x4x8xf32>
    %c0_32 = arith.constant 0 : index
    %c0_33 = arith.constant 0 : index
    %c0_34 = arith.constant 0 : index
    %c0_35 = arith.constant 0 : index
    %53 = vector.load %arg3[%c0_32, %c0_33, %c0_34, %c0_35] : memref<2x8x8x8xf32, #tpu.memory_space<vmem>>, vector<2x8x8x8xf32>
    %54 = vector.shape_cast %53 : vector<2x8x8x8xf32> to vector<16x8x8xf32>
    %c0_36 = arith.constant 0 : index
    %c0_37 = arith.constant 0 : index
    %55 = vector.load %arg8[%c0_36, %c0_37] : memref<4x8xf32, #tpu.memory_space<vmem>>, vector<4x8xf32>
    %56 = vector.shape_cast %55 : vector<4x8xf32> to vector<1x4x8xf32>
    %57 = vector.broadcast %56 : vector<1x4x8xf32> to vector<16x4x8xf32>
    %cst_38 = arith.constant dense<0.000000e+00> : vector<16x4x8xf32>
    %58 = tpu.matmul %57, %54, %cst_38 {dimension_numbers = #tpu.dot_dimension_numbers<[2], [1], [1], [2], [0, 0, 0, 1, 1, 2], [0], [0]>} : vector<16x4x8xf32>, vector<16x8x8xf32>, vector<16x4x8xf32> -> vector<16x4x8xf32>
    %59 = vector.shape_cast %58 : vector<16x4x8xf32> to vector<2x8x4x8xf32>
    %60 = arith.addf %52, %59 : vector<2x8x4x8xf32>
    %61 = vector.shape_cast %60 : vector<2x8x4x8xf32> to vector<64x8xf32>
    %c0_39 = arith.constant 0 : index
    %c0_40 = arith.constant 0 : index
    %62 = vector.load %arg11[%c0_39, %c0_40] : memref<8x16xf32, #tpu.memory_space<vmem>>, vector<8x16xf32>
    %cst_41 = arith.constant dense<0.000000e+00> : vector<64x16xf32>
    %63 = tpu.matmul %61, %62, %cst_41 {dimension_numbers = #tpu.dot_dimension_numbers<[1], [0], [0], [1], [0, 0, 1, 1], [], []>} : vector<64x8xf32>, vector<8x16xf32>, vector<64x16xf32> -> vector<64x16xf32>
    %64 = vector.shape_cast %63 : vector<64x16xf32> to vector<2x8x4x16xf32>
    %cst_42 = arith.constant 0.000000e+00 : f32
    %65 = vector.broadcast %cst_42 : f32 to vector<2x16x4x16xf32>
    %66 = vector.extract_strided_slice %64 {offsets = [0, 0, 0, 0], sizes = [2, 1, 4, 16], strides = [1, 1, 1, 1]} : vector<2x8x4x16xf32> to vector<2x1x4x16xf32>
    %c0_43 = arith.constant 0 : index
    %c0_44 = arith.constant 0 : index
    %c0_45 = arith.constant 0 : index
    %c0_46 = arith.constant 0 : index
    %67 = vector.load %arg12[%c0_43, %c0_44, %c0_45, %c0_46] : memref<8x16x1x1xf32, #tpu.memory_space<vmem>>, vector<1x16x1x1xf32>
    %68 = vector.shape_cast %67 : vector<1x16x1x1xf32> to vector<16x1x1xf32>
    %69 = vector.shape_cast %68 : vector<16x1x1xf32> to vector<1x16x1x1xf32>
    %70 = vector.broadcast %66 : vector<2x1x4x16xf32> to vector<2x16x4x16xf32>
    %71 = vector.broadcast %69 : vector<1x16x1x1xf32> to vector<2x16x4x16xf32>
    %72 = arith.mulf %70, %71 : vector<2x16x4x16xf32>
    %73 = arith.addf %65, %72 : vector<2x16x4x16xf32>
    %74 = vector.extract_strided_slice %64 {offsets = [0, 1, 0, 0], sizes = [2, 1, 4, 16], strides = [1, 1, 1, 1]} : vector<2x8x4x16xf32> to vector<2x1x4x16xf32>
    %c1_47 = arith.constant 1 : index
    %c0_48 = arith.constant 0 : index
    %c0_49 = arith.constant 0 : index
    %c0_50 = arith.constant 0 : index
    %75 = vector.load %arg12[%c1_47, %c0_48, %c0_49, %c0_50] : memref<8x16x1x1xf32, #tpu.memory_space<vmem>>, vector<1x16x1x1xf32>
    %76 = vector.shape_cast %75 : vector<1x16x1x1xf32> to vector<16x1x1xf32>
    %77 = vector.shape_cast %76 : vector<16x1x1xf32> to vector<1x16x1x1xf32>
    %78 = vector.broadcast %74 : vector<2x1x4x16xf32> to vector<2x16x4x16xf32>
    %79 = vector.broadcast %77 : vector<1x16x1x1xf32> to vector<2x16x4x16xf32>
    %80 = arith.mulf %78, %79 : vector<2x16x4x16xf32>
    %81 = arith.addf %73, %80 : vector<2x16x4x16xf32>
    %82 = vector.extract_strided_slice %64 {offsets = [0, 2, 0, 0], sizes = [2, 1, 4, 16], strides = [1, 1, 1, 1]} : vector<2x8x4x16xf32> to vector<2x1x4x16xf32>
    %c2 = arith.constant 2 : index
    %c0_51 = arith.constant 0 : index
    %c0_52 = arith.constant 0 : index
    %c0_53 = arith.constant 0 : index
    %83 = vector.load %arg12[%c2, %c0_51, %c0_52, %c0_53] : memref<8x16x1x1xf32, #tpu.memory_space<vmem>>, vector<1x16x1x1xf32>
    %84 = vector.shape_cast %83 : vector<1x16x1x1xf32> to vector<16x1x1xf32>
    %85 = vector.shape_cast %84 : vector<16x1x1xf32> to vector<1x16x1x1xf32>
    %86 = vector.broadcast %82 : vector<2x1x4x16xf32> to vector<2x16x4x16xf32>
    %87 = vector.broadcast %85 : vector<1x16x1x1xf32> to vector<2x16x4x16xf32>
    %88 = arith.mulf %86, %87 : vector<2x16x4x16xf32>
    %89 = arith.addf %81, %88 : vector<2x16x4x16xf32>
    %90 = vector.extract_strided_slice %64 {offsets = [0, 3, 0, 0], sizes = [2, 1, 4, 16], strides = [1, 1, 1, 1]} : vector<2x8x4x16xf32> to vector<2x1x4x16xf32>
    %c3 = arith.constant 3 : index
    %c0_54 = arith.constant 0 : index
    %c0_55 = arith.constant 0 : index
    %c0_56 = arith.constant 0 : index
    %91 = vector.load %arg12[%c3, %c0_54, %c0_55, %c0_56] : memref<8x16x1x1xf32, #tpu.memory_space<vmem>>, vector<1x16x1x1xf32>
    %92 = vector.shape_cast %91 : vector<1x16x1x1xf32> to vector<16x1x1xf32>
    %93 = vector.shape_cast %92 : vector<16x1x1xf32> to vector<1x16x1x1xf32>
    %94 = vector.broadcast %90 : vector<2x1x4x16xf32> to vector<2x16x4x16xf32>
    %95 = vector.broadcast %93 : vector<1x16x1x1xf32> to vector<2x16x4x16xf32>
    %96 = arith.mulf %94, %95 : vector<2x16x4x16xf32>
    %97 = arith.addf %89, %96 : vector<2x16x4x16xf32>
    %98 = vector.extract_strided_slice %64 {offsets = [0, 4, 0, 0], sizes = [2, 1, 4, 16], strides = [1, 1, 1, 1]} : vector<2x8x4x16xf32> to vector<2x1x4x16xf32>
    %c4 = arith.constant 4 : index
    %c0_57 = arith.constant 0 : index
    %c0_58 = arith.constant 0 : index
    %c0_59 = arith.constant 0 : index
    %99 = vector.load %arg12[%c4, %c0_57, %c0_58, %c0_59] : memref<8x16x1x1xf32, #tpu.memory_space<vmem>>, vector<1x16x1x1xf32>
    %100 = vector.shape_cast %99 : vector<1x16x1x1xf32> to vector<16x1x1xf32>
    %101 = vector.shape_cast %100 : vector<16x1x1xf32> to vector<1x16x1x1xf32>
    %102 = vector.broadcast %98 : vector<2x1x4x16xf32> to vector<2x16x4x16xf32>
    %103 = vector.broadcast %101 : vector<1x16x1x1xf32> to vector<2x16x4x16xf32>
    %104 = arith.mulf %102, %103 : vector<2x16x4x16xf32>
    %105 = arith.addf %97, %104 : vector<2x16x4x16xf32>
    %106 = vector.extract_strided_slice %64 {offsets = [0, 5, 0, 0], sizes = [2, 1, 4, 16], strides = [1, 1, 1, 1]} : vector<2x8x4x16xf32> to vector<2x1x4x16xf32>
    %c5 = arith.constant 5 : index
    %c0_60 = arith.constant 0 : index
    %c0_61 = arith.constant 0 : index
    %c0_62 = arith.constant 0 : index
    %107 = vector.load %arg12[%c5, %c0_60, %c0_61, %c0_62] : memref<8x16x1x1xf32, #tpu.memory_space<vmem>>, vector<1x16x1x1xf32>
    %108 = vector.shape_cast %107 : vector<1x16x1x1xf32> to vector<16x1x1xf32>
    %109 = vector.shape_cast %108 : vector<16x1x1xf32> to vector<1x16x1x1xf32>
    %110 = vector.broadcast %106 : vector<2x1x4x16xf32> to vector<2x16x4x16xf32>
    %111 = vector.broadcast %109 : vector<1x16x1x1xf32> to vector<2x16x4x16xf32>
    %112 = arith.mulf %110, %111 : vector<2x16x4x16xf32>
    %113 = arith.addf %105, %112 : vector<2x16x4x16xf32>
    %114 = vector.extract_strided_slice %64 {offsets = [0, 6, 0, 0], sizes = [2, 1, 4, 16], strides = [1, 1, 1, 1]} : vector<2x8x4x16xf32> to vector<2x1x4x16xf32>
    %c6 = arith.constant 6 : index
    %c0_63 = arith.constant 0 : index
    %c0_64 = arith.constant 0 : index
    %c0_65 = arith.constant 0 : index
    %115 = vector.load %arg12[%c6, %c0_63, %c0_64, %c0_65] : memref<8x16x1x1xf32, #tpu.memory_space<vmem>>, vector<1x16x1x1xf32>
    %116 = vector.shape_cast %115 : vector<1x16x1x1xf32> to vector<16x1x1xf32>
    %117 = vector.shape_cast %116 : vector<16x1x1xf32> to vector<1x16x1x1xf32>
    %118 = vector.broadcast %114 : vector<2x1x4x16xf32> to vector<2x16x4x16xf32>
    %119 = vector.broadcast %117 : vector<1x16x1x1xf32> to vector<2x16x4x16xf32>
    %120 = arith.mulf %118, %119 : vector<2x16x4x16xf32>
    %121 = arith.addf %113, %120 : vector<2x16x4x16xf32>
    %122 = vector.extract_strided_slice %64 {offsets = [0, 7, 0, 0], sizes = [2, 1, 4, 16], strides = [1, 1, 1, 1]} : vector<2x8x4x16xf32> to vector<2x1x4x16xf32>
    %c7 = arith.constant 7 : index
    %c0_66 = arith.constant 0 : index
    %c0_67 = arith.constant 0 : index
    %c0_68 = arith.constant 0 : index
    %123 = vector.load %arg12[%c7, %c0_66, %c0_67, %c0_68] : memref<8x16x1x1xf32, #tpu.memory_space<vmem>>, vector<1x16x1x1xf32>
    %124 = vector.shape_cast %123 : vector<1x16x1x1xf32> to vector<16x1x1xf32>
    %125 = vector.shape_cast %124 : vector<16x1x1xf32> to vector<1x16x1x1xf32>
    %126 = vector.broadcast %122 : vector<2x1x4x16xf32> to vector<2x16x4x16xf32>
    %127 = vector.broadcast %125 : vector<1x16x1x1xf32> to vector<2x16x4x16xf32>
    %128 = arith.mulf %126, %127 : vector<2x16x4x16xf32>
    %129 = arith.addf %121, %128 : vector<2x16x4x16xf32>
    %c0_69 = arith.constant 0 : index
    %c0_70 = arith.constant 0 : index
    %c0_71 = arith.constant 0 : index
    %c0_72 = arith.constant 0 : index
    %130 = vector.load %arg13[%c0_69, %c0_70, %c0_71, %c0_72] : memref<2x16x4x16xf32, #tpu.memory_space<vmem>>, vector<2x16x4x16xf32>
    tpu.vector_store %arg13[%c0_69, %c0_70, %c0_71, %c0_72], %129 {strides = array<i32>} : memref<2x16x4x16xf32, #tpu.memory_space<vmem>>, vector<2x16x4x16xf32>,
    return
  }
}

</mosaic_0001>

<bundles_post_ra>
// kernel: lraspp_head_forward.1
= control target key start
LH: loop header
LB: loop body
LE: loop exit
PB: predicated region body
PF: predicated region fallthrough
CT: control target
= control target key end

     0   :  { %v4583_v0 = vmov 0.0|0.0   ;;  %vm4584_vm0 = vmmov 0   ;;  %v4585_v4 = vmov 0.0   ;;  %vm151_vm1 = vcmask 261120   ;;  %s4588_s25 = smov 126   ;;  %s6380_s1 = inlined_call_operand.vmem [shape: f32[32,16], index: 1, kind: input, shape index: {}]   ;;  %s6381_s4 = inlined_call_operand.vmem [shape: f32[144,8], index: 4, kind: input, shape index: {}]   ;;  %s6382_s6 = inlined_call_operand.vmem [shape: f32[16,8], index: 6, kind: input, shape index: {}]   ;;  %s6383_s2 = inlined_call_operand.vmem [shape: f32[2,32], index: 2, kind: input, shape index: {}]   ;;  %s6384_s0 = inlined_call_operand.vmem [shape: f32[8,144], index: 0, kind: input, shape index: {}]   ;;  %s6385_s10 = inlined_call_operand.vmem [shape: f32[2,8,1,1], index: 10, kind: input, shape index: {}]   ;;  %s6386_s12 = inlined_call_operand.vmem [shape: f32[8,16,1,1], index: 12, kind: input, shape index: {}]   ;;  %s6387_s5 = inlined_call_operand.vmem [shape: f32[1,8], index: 5, kind: input, shape index: {}]   ;;  %s6388_s7 = inlined_call_operand.vmem [shape: f32[4,8], index: 7, kind: input, shape index: {}]   ;;  %s6389_s9 = inlined_call_operand.vmem [shape: f32[2,8], index: 9, kind: input, shape index: {}]   ;;  %s6390_s3 = inlined_call_operand.vmem [shape: f32[2,8,8,8], index: 3, kind: input, shape index: {}]   ;;  %s6391_s8 = inlined_call_operand.vmem [shape: f32[4,8], index: 8, kind: input, shape index: {}]   ;;  %s6392_s11 = inlined_call_operand.vmem [shape: f32[8,16], index: 11, kind: input, shape index: {}]   ;;  %s6393_s13 = inlined_call_operand.vmem [shape: f32[2,16,4,16], index: 13, kind: output, shape index: {}]  }
   0x1   :  { %4560 = vmatprep.subr.bf16.mxu1 %v4583_v0  ;;  %v147_v1 = vld [vmem:[%s6380_s1] sm:$0xff]  ;;  %v148_v2 = vld [vmem:[%s6380_s1 + $0x8] sm:$0xff]  ;;  %v149_v3 = vld [vmem:[%s6380_s1 + $0x10] sm:$0xff]  ;;  %4409 = vmatprep.mubr.msk.f32.mxu1 %vm4584_vm0, %v4585_v4  ;;  %vm71_vm2 = vcmask 130048   ;;  %v4586_v45 = vmov 0   ;;  %vm345_vm3 = vcmask 64512  }
   0x2   :  { %v4561_v5 = vpack.c.bf16 %v148_v2, %v147_v1  ;;  %v150_v6 = vld [vmem:[%s6380_s1 + $0x18] sm:$0xff]  ;;  %4533 = vmatprep.subr.bf16.mxu0 %v4583_v0  ;;  %v46_v7 = vld [vmem:[%s6381_s4] sm:$0xff]  ;;  %v47_v8 = vld [vmem:[%s6381_s4 + $0x8] sm:$0xff]  ;;  %4578 = vset.pattern.permute.xlu1 %v4586_v45  ;;  %vm502_vm4 = vcmask 1041408   ;;  %vm499_vm5 = vcmask 15360   ;;  %vm4006_vm6 = vcmask 125952  }
   0x3   :  { %v48_v9 = vld [vmem:[%s6381_s4 + $0x10] sm:$0xff]  ;;  %v49_v10 = vld [vmem:[%s6381_s4 + $0x18] sm:$0xff]  ;;  %v4564_v11 = vpack.c.bf16 %v150_v6, %v149_v3  ;;  %v4534_v12 = vpack.c.bf16 %v47_v8, %v46_v7  ;;  %v225_v13 = vld [vmem:[%s6382_s6] sm:$0xff]  ;;  %4577 = vset.pattern.permute.xlu0 %v4586_v45 }
   0x4   :  { %4562 = vmatpush3.bf16.msra.mxu1 %v4561_v5  ;;  %v226_v14 = vld [vmem:[%s6382_s6 + $0x8] sm:$0xff]  ;;  %v4537_v15 = vpack.c.bf16 %v49_v10, %v48_v9  ;;  %v146_v16 = vld [vmem:[%s6383_s2] sm:$0x3]  ;;  %v52_v21 = vld [vmem:[%s6381_s4 + $0x30] sm:$0xff] }
   0x5   :  { %4563 = vmatprep.subr.bf16.mxu1 %v4583_v0  ;;  %4535 = vmatpush1.bf16.msra.mxu0 %v4534_v12  ;;  %v4567_v17 = vpack.c.bf16 %v226_v14, %v225_v13  ;;  %v50_v18 = vld [vmem:[%s6381_s4 + $0x20] sm:$0xff]  ;;  %v51_v19 = vld [vmem:[%s6381_s4 + $0x28] sm:$0xff]  ;;  %v53_v22 = vld [vmem:[%s6381_s4 + $0x38] sm:$0xff] }
   0x6   :  { %4536 = vmatprep.subr.bf16.mxu0 %v4583_v0  ;;  %v4540_v20 = vpack.c.bf16 %v51_v19, %v50_v18  ;;  %v4543_v23 = vpack.c.bf16 %v53_v22, %v52_v21  ;;  %v54_v24 = vld [vmem:[%s6381_s4 + $0x40] sm:$0xff]  ;;  %v55_v25 = vld [vmem:[%s6381_s4 + $0x48] sm:$0xff]  ;;  %v56_v28 = vld [vmem:[%s6381_s4 + $0x50] sm:$0xff]  ;;  %v4587_v18 = vmov 1966171168  }
   0x7   :  { %v4546_v26 = vpack.c.bf16 %v55_v25, %v54_v24  ;;  %v45_v27 = vld [vmem:[%s6384_s0 + $0x8] sm:$0xff]  ;;  %v57_v29 = vld [vmem:[%s6381_s4 + $0x58] sm:$0xff]  ;;  %v58_v31 = vld [vmem:[%s6381_s4 + $0x60] sm:$0xff]  ;;  %v311_v19 = vunpack.c.l.s4 %v4587_v18 }
   0x8   :  { %4565 = vmatpush3.bf16.msra.mxu1 %v4564_v11  ;;  %4044 = vmatprep.mubr.msk.f32.mxu0 %vm71_vm2, %v45_v27  ;;  %v4549_v30 = vpack.c.bf16 %v57_v29, %v56_v28  ;;  %v59_v32 = vld [vmem:[%s6381_s4 + $0x68] sm:$0xff]  ;;  %v60_v34 = vld [vmem:[%s6381_s4 + $0x70] sm:$0xff]  ;;  %v61_v35 = vld [vmem:[%s6381_s4 + $0x78] sm:$0xff] }
   0x9   :  { %4566 = vmatprep.subr.bf16.mxu1 %v4583_v0  ;;  %4538 = vmatpush1.bf16.msra.mxu0 %v4537_v15  ;;  %v4552_v33 = vpack.c.bf16 %v59_v32, %v58_v31  ;;  %v4555_v36 = vpack.c.bf16 %v61_v35, %v60_v34  ;;  %v62_v37 = vld [vmem:[%s6381_s4 + $0x80] sm:$0xff]  ;;  %v63_v38 = vld [vmem:[%s6381_s4 + $0x88] sm:$0xff]  ;;  %v4136_v2 = vld [vmem:[%s6386_s12 + $0x10] ss:$0 sm:$0xff]  ;;  %v312_v21 = vunpack.c.0.s8 %v311_v19 }
   0xa   :  { %4539 = vmatprep.subr.bf16.mxu0 %v4583_v0  ;;  %v4558_v39 = vpack.c.bf16 %v63_v38, %v62_v37  ;;  %v44_v40 = vld [vmem:[%s6384_s0] sm:$0xff]  ;;  %v4072_v53 = vld [vmem:[%s6385_s10 + $0x8] ss:$0 sm:$0xff]  ;;  %v4074_v55 = vld [vmem:[%s6385_s10 + $0xa] ss:$0 sm:$0xff] }
   0xb   :  { %4410 = vmatmul.mubr.msk.f32.vlgmr.msra.gmra.mrb[0].mxu1 %vm151_vm1, %v146_v16  ;;  %v4056_v46 = vld [vmem:[%s6385_s10 + $0x2] ss:$0 sm:$0xff]  ;;  %v4057_v47 = vld [vmem:[%s6385_s10 + $0x3] ss:$0 sm:$0xff]  ;;  %v4059_v48 = vld [vmem:[%s6385_s10 + $0x5] ss:$0 sm:$0xff] }
   0xc   :  { %4568 = vmatpush3.bf16.msra.mxu1 %v4567_v17  ;;  %4416 = vmatprep.mubr.msk.f32.mxu1 %vm4584_vm0, %v4585_v4  ;;  %v4054_v49 = vld [vmem:[%s6385_s10] ss:$0 sm:$0xff]  ;;  %v4055_v50 = vld [vmem:[%s6385_s10 + $0x1] ss:$0 sm:$0xff]  ;;  %v4061_v51 = vld [vmem:[%s6385_s10 + $0x7] ss:$0 sm:$0xff] }
   0xd   :  { %4419 = vmatprep.subr.mxu1 %v4585_v4  ;;  %4541 = vmatpush1.bf16.msra.mxu0 %v4540_v20  ;;  %v4058_v52 = vld [vmem:[%s6385_s10 + $0x4] ss:$0 sm:$0xff]  ;;  %v4060_v54 = vld [vmem:[%s6385_s10 + $0x6] ss:$0 sm:$0xff]  ;;  %v4076_v56 = vld [vmem:[%s6385_s10 + $0xc] ss:$0 sm:$0xff]  ;;  %v313_v20 = vlaneseq }
   0xe   :  { %4542 = vmatprep.subr.bf16.mxu0 %v4583_v0  ;;  %636 = vperm.xlu1 %4578, %v4056_v46   ;;  %v4078_v57 = vld [vmem:[%s6385_s10 + $0xe] ss:$0 sm:$0xff]  ;;  %v4104_v58 = vld [vmem:[%s6386_s12] ss:$0 sm:$0xff]  ;;  %v4106_v59 = vld [vmem:[%s6386_s12 + $0x2] ss:$0 sm:$0xff] }
   0xf   :  { %628 = vperm.xlu0 %4577, %v4054_v49   ;;  %v4108_v60 = vld [vmem:[%s6386_s12 + $0x4] ss:$0 sm:$0xff]  ;;  %v4110_v61 = vld [vmem:[%s6386_s12 + $0x6] ss:$0 sm:$0xff]  ;;  %v4112_v62 = vld [vmem:[%s6386_s12 + $0x8] ss:$0 sm:$0xff] }
  0x10   :  { %v4114_v63 = vld [vmem:[%s6386_s12 + $0xa] ss:$0 sm:$0xff]  ;;  %v4118_v1 = vld [vmem:[%s6386_s12 + $0xe] ss:$0 sm:$0xff]  ;;  %v4138_v3 = vld [vmem:[%s6386_s12 + $0x12] ss:$0 sm:$0xff] }
  0x11   :  { %4544 = vmatpush1.bf16.msra.mxu0 %v4543_v23  ;;  %v4140_v5 = vld [vmem:[%s6386_s12 + $0x14] ss:$0 sm:$0xff]  ;;  %v4142_v6 = vld [vmem:[%s6386_s12 + $0x16] ss:$0 sm:$0xff]  ;;  %v4144_v7 = vld [vmem:[%s6386_s12 + $0x18] ss:$0 sm:$0xff] }
  0x12   :  { %4545 = vmatprep.subr.bf16.mxu0 %v4583_v0  ;;  %640 = vperm.xlu1 %4578, %v4057_v47   ;;  %v4146_v8 = vld [vmem:[%s6386_s12 + $0x1a] ss:$0 sm:$0xff]  ;;  %v4148_v12 = vld [vmem:[%s6386_s12 + $0x1c] ss:$0 sm:$0xff]  ;;  %v4150_v13 = vld [vmem:[%s6386_s12 + $0x1e] ss:$0 sm:$0xff] }
  0x13   :  { %632 = vperm.xlu0 %4577, %v4055_v50   ;;  %v4168_v14 = vld [vmem:[%s6386_s12 + $0x20] ss:$0 sm:$0xff]  ;;  %v4170_v16 = vld [vmem:[%s6386_s12 + $0x22] ss:$0 sm:$0xff]  ;;  %v314_v22 = vshrl.u32 %v313_v20, 7  ;;  %v887_v18 = vld [vmem:[%s6390_s3 + $0x30] sm:$0xff] }
  0x14   :  { %v4043_v23 = vld [vmem:[%s6387_s5] ss:$0 sm:$0xff]  ;;  %v4182_v45 = vld [vmem:[%s6386_s12 + $0x2e] ss:$0 sm:$0xff]  ;;  %v4200_v46 = vld [vmem:[%s6386_s12 + $0x30] ss:$0 sm:$0xff] }
  0x15   :  { %4547 = vmatpush1.bf16.msra.mxu0 %v4546_v26  ;;  %v315_v25 = vsub.s32 %v312_v21, %v314_v22  ;;  %v334_v29 = vsub.s32 0, %v314_v22  ;;  %v344_v38 = vld [vmem:[%s6388_s7] sm:$0xf]  ;;  %v4202_v47 = vld [vmem:[%s6386_s12 + $0x32] ss:$0 sm:$0xff] }
  0x16   :  { %4548 = vmatprep.subr.bf16.mxu0 %v4583_v0  ;;  %648 = vperm.xlu1 %4578, %v4059_v48   ;;  %v4204_v48 = vld [vmem:[%s6386_s12 + $0x34] ss:$0 sm:$0xff]  ;;  %v4206_v49 = vld [vmem:[%s6386_s12 + $0x36] ss:$0 sm:$0xff]  ;;  %v4208_v50 = vld [vmem:[%s6386_s12 + $0x38] ss:$0 sm:$0xff] }
  0x17   :  { %644 = vperm.xlu0 %4577, %v4058_v52   ;;  %v4212_v52 = vld [vmem:[%s6386_s12 + $0x3c] ss:$0 sm:$0xff]  ;;  %v889_v21 = vld [vmem:[%s6390_s3 + $0x40] sm:$0xff] }
  0x18   :  { %v4276_v20 = vld [vmem:[%s6386_s12 + $0x5c] ss:$0 sm:$0xff] }
  0x19   :  { %4550 = vmatpush1.bf16.msra.mxu0 %v4549_v30 }
  0x1a   :  { %4551 = vmatprep.subr.bf16.mxu0 %v4583_v0  ;;  %656 = vperm.xlu1 %4578, %v4061_v51   ;;  %v4210_v51 = vld [vmem:[%s6386_s12 + $0x3a] ss:$0 sm:$0xff] }
  0x1b   :  { %652 = vperm.xlu0 %4577, %v4060_v54   ;;  %v4214_v54 = vld [vmem:[%s6386_s12 + $0x3e] ss:$0 sm:$0xff] }
  0x1d   :  { %4553 = vmatpush1.bf16.msra.mxu0 %v4552_v33 }
  0x1e   :  { %4554 = vmatprep.subr.bf16.mxu0 %v4583_v0  ;;  %818 = vperm.xlu1 %4578, %v4072_v53  }
  0x21   :  { %4556 = vmatpush1.bf16.msra.mxu0 %v4555_v36 }
  0x22   :  { %4557 = vmatprep.subr.bf16.mxu0 %v4583_v0  ;;  %826 = vperm.xlu1 %4578, %v4074_v55   ;;  %v4116_v0 = vld [vmem:[%s6386_s12 + $0xc] ss:$0 sm:$0xff] }
  0x25   :  { %4559 = vmatpush1.bf16.msra.mxu0 %v4558_v39  ;;  %v4172_v39 = vld [vmem:[%s6386_s12 + $0x24] ss:$0 sm:$0xff] }
  0x26   :  { %4449 = vmatprep.subr.mxu0 %v4585_v4  ;;  %834 = vperm.xlu1 %4578, %v4076_v56   ;;  %v4232_v56 = vld [vmem:[%s6386_s12 + $0x40] ss:$0 sm:$0xff] }
  0x28   :  { %140 = vmatmul.mubr.f32.vlgmr.msra.gmra.mrb[0].mxu0 %v44_v40  ;;  %v4174_v40 = vld [vmem:[%s6386_s12 + $0x26] ss:$0 sm:$0xff] }
  0x29   :  { %4451 = vmatprep.mubr.msk.f32.mxu0 %vm4584_vm0, %v4585_v4 }
  0x2a   :  { %842 = vperm.xlu1 %4578, %v4078_v57   ;;  %v4234_v57 = vld [vmem:[%s6386_s12 + $0x42] ss:$0 sm:$0xff] }
  0x2e   :  { %2304 = vperm.xlu1 %4578, %v4104_v58  }
  0x32   :  { %2312 = vperm.xlu1 %4578, %v4106_v59   ;;  %v4236_v59 = vld [vmem:[%s6386_s12 + $0x44] ss:$0 sm:$0xff] }
  0x36   :  { %2320 = vperm.xlu1 %4578, %v4108_v60  }
  0x3a   :  { %2328 = vperm.xlu1 %4578, %v4110_v61   ;;  %v4238_v61 = vld [vmem:[%s6386_s12 + $0x46] ss:$0 sm:$0xff] }
  0x3e   :  { %2336 = vperm.xlu1 %4578, %v4112_v62   ;;  %v4240_v62 = vld [vmem:[%s6386_s12 + $0x48] ss:$0 sm:$0xff] }
  0x42   :  { %2344 = vperm.xlu1 %4578, %v4114_v63  }
  0x46   :  { %2352 = vperm.xlu1 %4578, %v4116_v0   ;;  %v4242_v0 = vld [vmem:[%s6386_s12 + $0x4a] ss:$0 sm:$0xff] }
  0x4a   :  { %2360 = vperm.xlu1 %4578, %v4118_v1  }
  0x4e   :  { %2529 = vperm.xlu1 %4578, %v4136_v2   ;;  %v4244_v2 = vld [vmem:[%s6386_s12 + $0x4c] ss:$0 sm:$0xff] }
  0x52   :  { %2537 = vperm.xlu1 %4578, %v4138_v3   ;;  %v4246_v3 = vld [vmem:[%s6386_s12 + $0x4e] ss:$0 sm:$0xff] }
  0x56   :  { %2545 = vperm.xlu1 %4578, %v4140_v5  }
  0x5a   :  { %2553 = vperm.xlu1 %4578, %v4142_v6   ;;  %v4264_v6 = vld [vmem:[%s6386_s12 + $0x50] ss:$0 sm:$0xff] }
  0x5e   :  { %2561 = vperm.xlu1 %4578, %v4144_v7  }
  0x62   :  { %2569 = vperm.xlu1 %4578, %v4146_v8   ;;  %v4266_v8 = vld [vmem:[%s6386_s12 + $0x52] ss:$0 sm:$0xff] }
  0x66   :  { %2577 = vperm.xlu1 %4578, %v4148_v12   ;;  %v883_v12 = vld [vmem:[%s6390_s3 + $0x10] sm:$0xff] }
  0x67   :  { %4450 = vmatpush3.msra.mxu0 %v883_v12  ;;  %v4340_v12 = vld [vmem:[%s6386_s12 + $0x7c] ss:$0 sm:$0xff] }
  0x68   :  { %4459 = vmatprep.subr.mxu0 %v4585_v4 }
  0x6a   :  { %2585 = vperm.xlu1 %4578, %v4150_v13  }
  0x6e   :  { %2754 = vperm.xlu1 %4578, %v4168_v14   ;;  %v4986_v14 = vld [vmem:[%s6391_s8] sm:$0xf] }
  0x6f   :  { %4452 = vmatmul.mubr.msk.f32.vlgmr.msra.gmra.mrb[2].mxu0 %vm345_vm3, %v4986_v14 }
  0x70   :  { %4461 = vmatprep.mubr.msk.f32.mxu0 %vm4584_vm0, %v4585_v4 }
  0x72   :  { %2762 = vperm.xlu1 %4578, %v4170_v16   ;;  %v885_v16 = vld [vmem:[%s6390_s3 + $0x20] sm:$0xff] }
  0x73   :  { %4460 = vmatpush3.msra.mxu0 %v885_v16  ;;  %v4342_v16 = vld [vmem:[%s6386_s12 + $0x7e] ss:$0 sm:$0xff] }
  0x74   :  { %4469 = vmatprep.subr.mxu0 %v4585_v4  ;;  %4462 = vmatmul.mubr.msk.f32.vlgmr.msra.gmra.mrb[4].mxu0 %vm345_vm3, %v4986_v14 }
  0x75   :  { %4470 = vmatpush3.msra.mxu0 %v887_v18  ;;  %4471 = vmatprep.mubr.msk.f32.mxu0 %vm4584_vm0, %v4585_v4 }
  0x76   :  { %2770 = vperm.xlu1 %4578, %v4172_v39   ;;  %4479 = vmatprep.subr.mxu0 %v4585_v4  ;;  %v4073_v39 = vld [vmem:[%s6385_s10 + $0x9] ss:$0 sm:$0xff] }
  0x78   :  { %4472 = vmatmul.mubr.msk.f32.vlgmr.msra.gmra.mrb[6].mxu0 %vm345_vm3, %v4986_v14 }
  0x79   :  { %4480 = vmatpush3.msra.mxu0 %v889_v21  ;;  %4481 = vmatprep.mubr.msk.f32.mxu0 %vm4584_vm0, %v4585_v4  ;;  %v4139_v21 = vld [vmem:[%s6386_s12 + $0x13] ss:$0 sm:$0xff] }
  0x7a   :  { %2778 = vperm.xlu1 %4578, %v4174_v40   ;;  %4489 = vmatprep.subr.mxu0 %v4585_v4  ;;  %v4304_v40 = vld [vmem:[%s6386_s12 + $0x68] ss:$0 sm:$0xff] }
  0x7c   :  { %4482 = vmatmul.mubr.msk.f32.vlgmr.msra.gmra.mrb[8].mxu0 %vm345_vm3, %v4986_v14 }
  0x7d   :  { %4491 = vmatprep.mubr.msk.f32.mxu0 %vm4584_vm0, %v4585_v4 }
  0x8d   :  { %v4920_v53 = vpop.permute.xlu1 %636 }
  0x91   :  { %v4925_v55 = vpop.permute.xlu1 %640 }
  0x95   :  { %v4933_v58 = vpop.permute.xlu1 %648 }
  0x99   :  { %v4938_v60 = vpop.permute.xlu1 %656 }
  0x9d   :  { %v4946_v63 = vpop.permute.xlu1 %818 }
  0xa1   :  { %v4951_v1 = vpop.permute.xlu1 %826 }
  0xa5   :  { %v4959_v5 = vpop.permute.xlu1 %834 }
  0xa9   :  { %v4964_v7 = vpop.permute.xlu1 %842 }
  0xde   :  { %v221_v41 = vpop.f32.mrb[0].mxu1 }
  0xdf   :  { %v4411_v42 = vpop.f32.mrb[1].mxu1  ;;  %4417 = vmatmul.mubr.msk.f32.vlgmr.msra.gmra.mrb[2].mxu1 %vm71_vm2, %v221_v41  ;;  %v4882_v41 = vld [vmem:[%s6389_s9] sm:$0x3] }
  0xe0   :  { %4421 = vmatprep.mubr.msk.f32.mxu1 %vm4584_vm0, %v4585_v4  ;;  %v4176_v42 = vld [vmem:[%s6386_s12 + $0x28] ss:$0 sm:$0xff] }
  0xe1   :  { %2786 = vperm.xlu1 %4578, %v4176_v42  }
  0xfb   :  { %v4764_v43 = vpop.f32.mrb[0].mxu0 }
  0xfc   :  { %v143_v44 = vpop.f32.mrb[1].mxu0  ;;  %v142_v24 = vadd.f32 %v4043_v23, %v4764_v43  ;;  %v4178_v43 = vld [vmem:[%s6386_s12 + $0x2a] ss:$0 sm:$0xff]  ;;  %v4278_v23 = vld [vmem:[%s6386_s12 + $0x5e] ss:$0 sm:$0xff] }
  0xfd   :  { %2794 = vperm.xlu1 %4578, %v4178_v43   ;;  %v4180_v44 = vld [vmem:[%s6386_s12 + $0x2c] ss:$0 sm:$0xff]  ;;  %v4075_v43 = vld [vmem:[%s6385_s10 + $0xb] ss:$0 sm:$0xff] }
  0xfe   :  { %v145_v27 = vmax.f32 %v142_v24, 0.0  ;;  %v891_v24 = vld [vmem:[%s6390_s3 + $0x50] sm:$0xff] }
  0xff   :  { %4490 = vmatpush3.msra.mxu0 %v891_v24  ;;  %v4143_v24 = vld [vmem:[%s6386_s12 + $0x17] ss:$0 sm:$0xff] }
 0x100   :  { %v307_v32 = vcombine.high %v145_v27, %v145_v27  ;;  %4499 = vmatprep.subr.mxu0 %v4585_v4  ;;  %4492 = vmatmul.mubr.msk.f32.vlgmr.msra.gmra.mrb[10].mxu0 %vm345_vm3, %v4986_v14 }
 0x101   :  { %2802 = vperm.xlu1 %4578, %v4180_v44   ;;  %4501 = vmatprep.mubr.msk.f32.mxu0 %vm4584_vm0, %v4585_v4  ;;  %v4077_v44 = vld [vmem:[%s6385_s10 + $0xd] ss:$0 sm:$0xff] }
 0x105   :  { %2810 = vperm.xlu1 %4578, %v4182_v45   ;;  %v4308_v45 = vld [vmem:[%s6386_s12 + $0x6c] ss:$0 sm:$0xff] }
 0x109   :  { %2979 = vperm.xlu1 %4578, %v4200_v46  }
 0x10d   :  { %2987 = vperm.xlu1 %4578, %v4202_v47   ;;  %v4079_v47 = vld [vmem:[%s6385_s10 + $0xf] ss:$0 sm:$0xff] }
 0x111   :  { %2995 = vperm.xlu1 %4578, %v4204_v48   ;;  %v4310_v48 = vld [vmem:[%s6386_s12 + $0x6e] ss:$0 sm:$0xff] }
 0x115   :  { %3003 = vperm.xlu1 %4578, %v4206_v49  }
 0x119   :  { %3011 = vperm.xlu1 %4578, %v4208_v50   ;;  %v4105_v50 = vld [vmem:[%s6386_s12 + $0x1] ss:$0 sm:$0xff] }
 0x11d   :  { %3019 = vperm.xlu1 %4578, %v4210_v51   ;;  %v4328_v51 = vld [vmem:[%s6386_s12 + $0x70] ss:$0 sm:$0xff] }
 0x121   :  { %3027 = vperm.xlu1 %4578, %v4212_v52   ;;  %v4107_v52 = vld [vmem:[%s6386_s12 + $0x3] ss:$0 sm:$0xff] }
 0x125   :  { %3035 = vperm.xlu1 %4578, %v4214_v54   ;;  %v4330_v54 = vld [vmem:[%s6386_s12 + $0x72] ss:$0 sm:$0xff] }
 0x129   :  { %3204 = vperm.xlu1 %4578, %v4232_v56  }
 0x12d   :  { %3212 = vperm.xlu1 %4578, %v4234_v57   ;;  %v4332_v57 = vld [vmem:[%s6386_s12 + $0x74] ss:$0 sm:$0xff] }
 0x131   :  { %3220 = vperm.xlu1 %4578, %v4236_v59   ;;  %v4109_v59 = vld [vmem:[%s6386_s12 + $0x5] ss:$0 sm:$0xff] }
 0x135   :  { %3228 = vperm.xlu1 %4578, %v4238_v61  }
 0x139   :  { %3236 = vperm.xlu1 %4578, %v4240_v62   ;;  %v4334_v62 = vld [vmem:[%s6386_s12 + $0x76] ss:$0 sm:$0xff] }
 0x13d   :  { %3244 = vperm.xlu1 %4578, %v4242_v0   ;;  %v4111_v0 = vld [vmem:[%s6386_s12 + $0x7] ss:$0 sm:$0xff] }
 0x141   :  { %3252 = vperm.xlu1 %4578, %v4244_v2   ;;  %v4336_v2 = vld [vmem:[%s6386_s12 + $0x78] ss:$0 sm:$0xff] }
 0x145   :  { %3260 = vperm.xlu1 %4578, %v4246_v3   ;;  %v4113_v3 = vld [vmem:[%s6386_s12 + $0x9] ss:$0 sm:$0xff] }
 0x149   :  { %3429 = vperm.xlu1 %4578, %v4264_v6  }
 0x14d   :  { %3437 = vperm.xlu1 %4578, %v4266_v8   ;;  %v4338_v8 = vld [vmem:[%s6386_s12 + $0x7a] ss:$0 sm:$0xff] }
 0x1b2   :  { %v296_v9 = vpop.f32.mrb[2].mxu1 }
 0x1b3   :  { %v4047_v10 = vmul.f32 -1.442695, %v296_v9  ;;  %v4418_v11 = vpop.f32.mrb[3].mxu1  ;;  %v4268_v9 = vld [vmem:[%s6386_s12 + $0x54] ss:$0 sm:$0xff] }
 0x1b4   :  { %3445 = vperm.xlu1 %4578, %v4268_v9   ;;  %v4270_v11 = vld [vmem:[%s6386_s12 + $0x56] ss:$0 sm:$0xff]  ;;  %v4115_v9 = vld [vmem:[%s6386_s12 + $0xb] ss:$0 sm:$0xff] }
 0x1b5   :  { %4579 = vpow2.f32 %v4047_v10  ;;  %v4972_v10 = vpop.permute.xlu1 %2304 }
 0x1b6   :  { %6527 = vst [vmem:[#allocation2_spill] sm:$0xff] %v4972_v10 }
 0x1b8   :  { %3453 = vperm.xlu1 %4578, %v4270_v11  }
 0x1b9   :  { %v4981_v13 = vpop.permute.xlu1 %2312 }
 0x1ba   :  { %6528 = vst [vmem:[#allocation3_spill] sm:$0xff] %v4981_v13 }
 0x1bd   :  { %v5007_v19 = vpop.permute.xlu1 %2320 }
 0x1be   :  { %6529 = vst [vmem:[#allocation4_spill] sm:$0xff] %v5007_v19 }
 0x1bf   :  { %v4580_v15 = vpop.eup %4579 }
 0x1c0   :  { %v303_v17 = vadd.f32 1.0, %v4580_v15  ;;  %v4272_v15 = vld [vmem:[%s6386_s12 + $0x58] ss:$0 sm:$0xff] }
 0x1c1   :  { %3461 = vperm.xlu1 %4578, %v4272_v15   ;;  %v5023_v22 = vpop.permute.xlu1 %2328  ;;  %v4117_v15 = vld [vmem:[%s6386_s12 + $0xd] ss:$0 sm:$0xff] }
 0x1c2   :  { %4581 = vrcp.f32 %v303_v17  ;;  %v4274_v17 = vld [vmem:[%s6386_s12 + $0x5a] ss:$0 sm:$0xff]  ;;  %6530 = vst [vmem:[#allocation5_spill] sm:$0xff] %v5023_v22 }
 0x1c5   :  { %3469 = vperm.xlu1 %4578, %v4274_v17   ;;  %v4119_v17 = vld [vmem:[%s6386_s12 + $0xf] ss:$0 sm:$0xff] }
 0x1c9   :  { %3477 = vperm.xlu1 %4578, %v4276_v20   ;;  %v4137_v20 = vld [vmem:[%s6386_s12 + $0x11] ss:$0 sm:$0xff] }
 0x1cc   :  { %v4582_v26 = vpop.eup %4581 }
 0x1cd   :  { %v316_v28 = vrot.slane %v4582_v26, %v315_v25  ;;  %3485 = vperm.xlu1 %4578, %v4278_v23   ;;  %v5041_v26 = vpop.permute.xlu1 %2336  ;;  %v4141_v23 = vld [vmem:[%s6386_s12 + $0x15] ss:$0 sm:$0xff] }
 0x1ce   :  { %6531 = vst [vmem:[#allocation6_spill] sm:$0xff] %v5041_v26 }
 0x1cf   :  { %v317_v30 = vcombine.high %v316_v28, %v316_v28  ;;  %v324_v31 = vrot.slane %v316_v28, %v315_v25  ;;  %v4298_v28 = vld [vmem:[%s6386_s12 + $0x62] ss:$0 sm:$0xff] }
 0x1d1   :  { %v331_v33 = vrot.slane %v317_v30, %v315_v25  ;;  %v335_v34 = vrot.slane %v324_v31, %v334_v29  ;;  %v4296_v25 = vld [vmem:[%s6386_s12 + $0x60] ss:$0 sm:$0xff]  ;;  %v5059_v30 = vpop.permute.xlu1 %2344 }
 0x1d2   :  { %3654 = vperm.xlu1 %4578, %v4296_v25   ;;  %6532 = vst [vmem:[#allocation7_spill] sm:$0xff] %v5059_v30  ;;  %v4145_v25 = vld [vmem:[%s6386_s12 + $0x19] ss:$0 sm:$0xff] }
 0x1d3   :  { %v339_v35 = vrot.slane %v331_v33, %v334_v29  ;;  %v342_v36 = vmul.f32 %v335_v34, %v145_v27  ;;  %v893_v27 = vld [vmem:[%s6390_s3 + $0x60] sm:$0xff]  ;;  %v895_v29 = vld [vmem:[%s6390_s3 + $0x70] sm:$0xff] }
 0x1d4   :  { %4500 = vmatpush3.msra.mxu0 %v893_v27  ;;  %v4147_v27 = vld [vmem:[%s6386_s12 + $0x1b] ss:$0 sm:$0xff] }
 0x1d5   :  { %v343_v37 = vmul.f32 %v339_v35, %v307_v32  ;;  %4420 = vmatpush3.xpose.msk.msra.mxu1 %vm345_vm3, %v342_v36  ;;  %4502 = vmatmul.mubr.msk.f32.vlgmr.msra.gmra.mrb[12].mxu0 %vm345_vm3, %v4986_v14  ;;  %v4300_v32 = vld [vmem:[%s6386_s12 + $0x64] ss:$0 sm:$0xff]  ;;  %v4302_v35 = vld [vmem:[%s6386_s12 + $0x66] ss:$0 sm:$0xff] }
 0x1d6   :  { %4424 = vmatprep.subr.mxu1 %v4585_v4  ;;  %4509 = vmatprep.subr.mxu0 %v4585_v4 }
 0x1d7   :  { %3662 = vperm.xlu1 %4578, %v4298_v28   ;;  %4511 = vmatprep.mubr.msk.f32.mxu0 %vm4584_vm0, %v4585_v4  ;;  %v4149_v28 = vld [vmem:[%s6386_s12 + $0x1d] ss:$0 sm:$0xff] }
 0x1d8   :  { %4422 = vmatmul.mubr.msk.f32.vlgmr.msra.gmra.mrb[4].mxu1 %vm345_vm3, %v344_v38  ;;  %4510 = vmatpush3.msra.mxu0 %v895_v29  ;;  %v4151_v29 = vld [vmem:[%s6386_s12 + $0x1f] ss:$0 sm:$0xff] }
 0x1d9   :  { %4425 = vmatpush3.xpose.msk.msra.mxu1 %vm345_vm3, %v343_v37  ;;  %4426 = vmatprep.mubr.msk.f32.mxu1 %vm4584_vm0, %v4585_v4 }
 0x1da   :  { %4429 = vmatprep.subr.mxu1 %v4585_v4  ;;  %4512 = vmatmul.mubr.msk.f32.vlgmr.msra.gmra.mrb[14].mxu0 %vm345_vm3, %v4986_v14 }
 0x1db   :  { %3670 = vperm.xlu1 %4578, %v4300_v32   ;;  %v4171_v32 = vld [vmem:[%s6386_s12 + $0x23] ss:$0 sm:$0xff] }
 0x1dc   :  { %4427 = vmatmul.mubr.msk.f32.vlgmr.msra.gmra.mrb[6].mxu1 %vm345_vm3, %v344_v38  ;;  %v5069_v38 = vpop.permute.xlu1 %2352 }
 0x1dd   :  { %4431 = vmatprep.mubr.msk.f32.mxu1 %vm4584_vm0, %v4585_v4  ;;  %4430 = vmatpush3.msk.msra.mxu1 %vm502_vm4, %v4882_v41  ;;  %6533 = vst [vmem:[#allocation8_spill] sm:$0xff] %v5069_v38 }
 0x1de   :  { %4434 = vmatprep.subr.mxu1 %v4585_v4 }
 0x1df   :  { %3678 = vperm.xlu1 %4578, %v4302_v35   ;;  %v4175_v35 = vld [vmem:[%s6386_s12 + $0x27] ss:$0 sm:$0xff] }
 0x1e0   :  { %v5083_v42 = vpop.permute.xlu1 %2360 }
 0x1e1   :  { %6534 = vst [vmem:[#allocation9_spill] sm:$0xff] %v5083_v42 }
 0x1e3   :  { %3686 = vperm.xlu1 %4578, %v4304_v40  }
 0x1e4   :  { %v5097_v46 = vpop.permute.xlu1 %2529 }
 0x1e5   :  { %6535 = vst [vmem:[#allocation10_spill] sm:$0xff] %v5097_v46 }
 0x1e8   :  { %v5105_v49 = vpop.permute.xlu1 %2537 }
 0x1e9   :  { %6536 = vst [vmem:[#allocation11_spill] sm:$0xff] %v5105_v49 }
 0x1ec   :  { %v5119_v56 = vpop.permute.xlu1 %2545 }
 0x1ed   :  { %6537 = vst [vmem:[#allocation12_spill] sm:$0xff] %v5119_v56 }
 0x1f0   :  { %v5127_v61 = vpop.permute.xlu1 %2553 }
 0x1f1   :  { %6538 = vst [vmem:[#allocation13_spill] sm:$0xff] %v5127_v61 }
 0x1f4   :  { %v5141_v6 = vpop.permute.xlu1 %2561 }
 0x1f5   :  { %6539 = vst [vmem:[#allocation14_spill] sm:$0xff] %v5141_v6 }
 0x1f8   :  { %v5149_v11 = vpop.permute.xlu1 %2569 }
 0x1f9   :  { %6540 = vst [vmem:[#allocation15_spill] sm:$0xff] %v5149_v11 }
 0x1fc   :  { %v5163_v18 = vpop.permute.xlu1 %2577 }
 0x1fd   :  { %6541 = vst [vmem:[#allocation16_spill] sm:$0xff] %v5163_v18 }
 0x2ab   :  { %v418_v31 = vpop.f32.mrb[4].mxu1 }
 0x2ac   :  { %v4423_v33 = vpop.f32.mrb[5].mxu1 }
 0x2ad   :  { %v4173_v33 = vld [vmem:[%s6386_s12 + $0x25] ss:$0 sm:$0xff] }
 0x2af   :  { %v491_v34 = vpop.f32.mrb[6].mxu1 }
 0x2b0   :  { %v498_v36 = vcombine.low %v418_v31, %v491_v34  ;;  %v4428_v37 = vpop.f32.mrb[7].mxu1  ;;  %v4169_v31 = vld [vmem:[%s6386_s12 + $0x21] ss:$0 sm:$0xff]  ;;  %v5198_v34 = vpop.permute.xlu0 %628 }
 0x2b2   :  { %691 = vrot.lane.b32.xlu0 %v498_v36, %s4588_s25  ;;  %4432 = vmatmul.mubr.msk.f32.vlgmr.msra.gmra.mrb[8].mxu1 %vm499_vm5, %v498_v36  ;;  %v4177_v36 = vld [vmem:[%s6386_s12 + $0x29] ss:$0 sm:$0xff] }
 0x2b3   :  { %4435 = vmatpush3.msk.msra.mxu1 %vm502_vm4, %v4882_v41  ;;  %4436 = vmatprep.mubr.msk.f32.mxu1 %vm4584_vm0, %v4585_v4  ;;  %v4306_v41 = vld [vmem:[%s6386_s12 + $0x6a] ss:$0 sm:$0xff] }
 0x2b4   :  { %4439 = vmatprep.subr.mxu1 %v4585_v4  ;;  %3694 = vperm.xlu1 %4578, %v4306_v41   ;;  %v5206_v37 = vpop.permute.xlu0 %632  ;;  %v4183_v41 = vld [vmem:[%s6386_s12 + $0x2f] ss:$0 sm:$0xff] }
 0x2b6   :  { %822 = vperm.xlu0 %4577, %v4073_v39   ;;  %v4179_v39 = vld [vmem:[%s6386_s12 + $0x2b] ss:$0 sm:$0xff] }
 0x2b8   :  { %3702 = vperm.xlu1 %4578, %v4308_v45   ;;  %v5211_v40 = vpop.permute.xlu0 %644  ;;  %v4201_v45 = vld [vmem:[%s6386_s12 + $0x31] ss:$0 sm:$0xff] }
 0x2ba   :  { %830 = vperm.xlu0 %4577, %v4075_v43   ;;  %v4181_v43 = vld [vmem:[%s6386_s12 + $0x2d] ss:$0 sm:$0xff] }
 0x2bc   :  { %3710 = vperm.xlu1 %4578, %v4310_v48  }
 0x2be   :  { %838 = vperm.xlu0 %4577, %v4077_v44   ;;  %v5219_v44 = vpop.permute.xlu0 %652 }
 0x2c0   :  { %3879 = vperm.xlu1 %4578, %v4328_v51   ;;  %v882_v51 = vld [vmem:[%s6390_s3 + $0x8] sm:$0xff] }
 0x2c2   :  { %846 = vperm.xlu0 %4577, %v4079_v47   ;;  %v881_v47 = vld [vmem:[%s6390_s3] sm:$0xff] }
 0x2c4   :  { %3887 = vperm.xlu1 %4578, %v4330_v54   ;;  %v884_v54 = vld [vmem:[%s6390_s3 + $0x18] sm:$0xff] }
 0x2c6   :  { %2308 = vperm.xlu0 %4577, %v4105_v50   ;;  %v4203_v50 = vld [vmem:[%s6386_s12 + $0x33] ss:$0 sm:$0xff] }
 0x2c8   :  { %3895 = vperm.xlu1 %4578, %v4332_v57   ;;  %v4207_v57 = vld [vmem:[%s6386_s12 + $0x37] ss:$0 sm:$0xff] }
 0x2ca   :  { %2316 = vperm.xlu0 %4577, %v4107_v52   ;;  %v4205_v52 = vld [vmem:[%s6386_s12 + $0x35] ss:$0 sm:$0xff] }
 0x2cc   :  { %3903 = vperm.xlu1 %4578, %v4334_v62   ;;  %v4209_v62 = vld [vmem:[%s6386_s12 + $0x39] ss:$0 sm:$0xff] }
 0x2ce   :  { %2324 = vperm.xlu0 %4577, %v4109_v59   ;;  %v886_v59 = vld [vmem:[%s6390_s3 + $0x28] sm:$0xff] }
 0x2d0   :  { %3911 = vperm.xlu1 %4578, %v4336_v2   ;;  %v4211_v2 = vld [vmem:[%s6386_s12 + $0x3b] ss:$0 sm:$0xff] }
 0x2d2   :  { %2332 = vperm.xlu0 %4577, %v4111_v0   ;;  %v888_v0 = vld [vmem:[%s6390_s3 + $0x38] sm:$0xff] }
 0x2d4   :  { %3919 = vperm.xlu1 %4578, %v4338_v8   ;;  %v4213_v8 = vld [vmem:[%s6386_s12 + $0x3d] ss:$0 sm:$0xff] }
 0x2d6   :  { %2340 = vperm.xlu0 %4577, %v4113_v3   ;;  %v890_v3 = vld [vmem:[%s6390_s3 + $0x48] sm:$0xff] }
 0x2d8   :  { %3927 = vperm.xlu1 %4578, %v4340_v12   ;;  %v4215_v12 = vld [vmem:[%s6386_s12 + $0x3f] ss:$0 sm:$0xff] }
 0x2da   :  { %2348 = vperm.xlu0 %4577, %v4115_v9   ;;  %v892_v9 = vld [vmem:[%s6390_s3 + $0x58] sm:$0xff] }
 0x2dc   :  { %3935 = vperm.xlu1 %4578, %v4342_v16   ;;  %v4233_v16 = vld [vmem:[%s6386_s12 + $0x41] ss:$0 sm:$0xff] }
 0x2de   :  { %2356 = vperm.xlu0 %4577, %v4117_v15   ;;  %v894_v15 = vld [vmem:[%s6390_s3 + $0x68] sm:$0xff] }
 0x2e2   :  { %2364 = vperm.xlu0 %4577, %v4119_v17   ;;  %v896_v17 = vld [vmem:[%s6390_s3 + $0x78] sm:$0xff] }
 0x2e6   :  { %2533 = vperm.xlu0 %4577, %v4137_v20   ;;  %v4235_v20 = vld [vmem:[%s6386_s12 + $0x43] ss:$0 sm:$0xff] }
 0x2ea   :  { %2541 = vperm.xlu0 %4577, %v4139_v21   ;;  %v4237_v21 = vld [vmem:[%s6386_s12 + $0x45] ss:$0 sm:$0xff] }
 0x2ee   :  { %2549 = vperm.xlu0 %4577, %v4141_v23   ;;  %v4239_v23 = vld [vmem:[%s6386_s12 + $0x47] ss:$0 sm:$0xff] }
 0x2f2   :  { %2557 = vperm.xlu0 %4577, %v4143_v24  }
 0x2f6   :  { %2565 = vperm.xlu0 %4577, %v4145_v25   ;;  %v4245_v25 = vld [vmem:[%s6386_s12 + $0x4d] ss:$0 sm:$0xff] }
 0x2fa   :  { %2573 = vperm.xlu0 %4577, %v4147_v27  }
 0x2fe   :  { %2581 = vperm.xlu0 %4577, %v4149_v28   ;;  %v4247_v28 = vld [vmem:[%s6386_s12 + $0x4f] ss:$0 sm:$0xff] }
 0x302   :  { %2589 = vperm.xlu0 %4577, %v4151_v29  }
 0x306   :  { %2758 = vperm.xlu0 %4577, %v4169_v31   ;;  %v4265_v31 = vld [vmem:[%s6386_s12 + $0x51] ss:$0 sm:$0xff] }
 0x30a   :  { %2766 = vperm.xlu0 %4577, %v4171_v32   ;;  %v4267_v32 = vld [vmem:[%s6386_s12 + $0x53] ss:$0 sm:$0xff] }
 0x30e   :  { %2774 = vperm.xlu0 %4577, %v4173_v33  }
 0x312   :  { %2782 = vperm.xlu0 %4577, %v4175_v35   ;;  %v4269_v35 = vld [vmem:[%s6386_s12 + $0x55] ss:$0 sm:$0xff] }
 0x316   :  { %2790 = vperm.xlu0 %4577, %v4177_v36  }
 0x31a   :  { %2798 = vperm.xlu0 %4577, %v4179_v39   ;;  %v4271_v39 = vld [vmem:[%s6386_s12 + $0x57] ss:$0 sm:$0xff] }
 0x31e   :  { %2806 = vperm.xlu0 %4577, %v4181_v43   ;;  %v5363_v43 = vpop.f32.mrb[2].mxu0 }
 0x322   :  { %2814 = vperm.xlu0 %4577, %v4183_v41   ;;  %v4453_v41 = vpop.f32.mrb[3].mxu0 }
 0x323   :  { %v4307_v41 = vld [vmem:[%s6386_s12 + $0x6b] ss:$0 sm:$0xff] }
 0x324   :  { %v692_v48 = vpop.permute.xlu0 %691 }
 0x325   :  { %4437 = vmatmul.mubr.msk.f32.vlgmr.msra.gmra.mrb[10].mxu1 %vm499_vm5, %v692_v48 }
 0x326   :  { %2983 = vperm.xlu0 %4577, %v4201_v45   ;;  %4440 = vmatpush3.msra.mxu1 %v881_v47  ;;  %v4273_v45 = vld [vmem:[%s6386_s12 + $0x59] ss:$0 sm:$0xff]  ;;  %v5368_v47 = vpop.f32.mrb[4].mxu0 }
 0x327   :  { %4441 = vmatprep.mubr.msk.f32.mxu1 %vm4584_vm0, %v4585_v4  ;;  %4444 = vmatprep.subr.mxu1 %v4585_v4 }
 0x329   :  { %4442 = vmatmul.mubr.msk.f32.vlgmr.msra.gmra.mrb[12].mxu1 %vm345_vm3, %v4986_v14 }
 0x32a   :  { %2991 = vperm.xlu0 %4577, %v4203_v50   ;;  %4445 = vmatpush3.msra.mxu1 %v882_v51  ;;  %v4463_v50 = vpop.f32.mrb[5].mxu0 }
 0x32b   :  { %4446 = vmatprep.mubr.msk.f32.mxu1 %vm4584_vm0, %v4585_v4  ;;  %4454 = vmatprep.subr.mxu1 %v4585_v4  ;;  %v5372_v51 = vpop.f32.mrb[6].mxu0  ;;  %v4309_v50 = vld [vmem:[%s6386_s12 + $0x6d] ss:$0 sm:$0xff] }
 0x32d   :  { %4447 = vmatmul.mubr.msk.f32.vlgmr.msra.gmra.mrb[14].mxu1 %vm345_vm3, %v4986_v14 }
 0x32e   :  { %2999 = vperm.xlu0 %4577, %v4205_v52   ;;  %4455 = vmatpush3.msra.mxu1 %v884_v54  ;;  %v4473_v52 = vpop.f32.mrb[7].mxu0  ;;  %v4275_v54 = vld [vmem:[%s6386_s12 + $0x5b] ss:$0 sm:$0xff] }
 0x32f   :  { %4456 = vmatprep.mubr.msk.f32.mxu1 %vm4584_vm0, %v4585_v4  ;;  %4464 = vmatprep.subr.mxu1 %v4585_v4 }
 0x331   :  { %4457 = vmatmul.mubr.msk.f32.vlgmr.msra.gmra.mrb[16].mxu1 %vm345_vm3, %v4986_v14 }
 0x332   :  { %3007 = vperm.xlu0 %4577, %v4207_v57   ;;  %4465 = vmatpush3.msra.mxu1 %v886_v59  ;;  %v5377_v57 = vpop.f32.mrb[8].mxu0 }
 0x333   :  { %4466 = vmatprep.mubr.msk.f32.mxu1 %vm4584_vm0, %v4585_v4  ;;  %4474 = vmatprep.subr.mxu1 %v4585_v4  ;;  %v4483_v59 = vpop.f32.mrb[9].mxu0 }
 0x334   :  { %v4329_v59 = vld [vmem:[%s6386_s12 + $0x71] ss:$0 sm:$0xff] }
 0x335   :  { %4467 = vmatmul.mubr.msk.f32.vlgmr.msra.gmra.mrb[18].mxu1 %vm345_vm3, %v4986_v14  ;;  %v5332_v24 = vpop.permute.xlu0 %822 }
 0x336   :  { %3015 = vperm.xlu0 %4577, %v4209_v62   ;;  %4475 = vmatpush3.msra.mxu1 %v888_v0  ;;  %v5381_v0 = vpop.f32.mrb[10].mxu0 }
 0x337   :  { %4476 = vmatprep.mubr.msk.f32.mxu1 %vm4584_vm0, %v4585_v4  ;;  %4484 = vmatprep.subr.mxu1 %v4585_v4 }
 0x339   :  { %4477 = vmatmul.mubr.msk.f32.vlgmr.msra.gmra.mrb[20].mxu1 %vm345_vm3, %v4986_v14  ;;  %v5340_v27 = vpop.permute.xlu0 %830 }
 0x33a   :  { %3023 = vperm.xlu0 %4577, %v4211_v2   ;;  %4485 = vmatpush3.msra.mxu1 %v890_v3  ;;  %v4277_v2 = vld [vmem:[%s6386_s12 + $0x5d] ss:$0 sm:$0xff]  ;;  %v4493_v3 = vpop.f32.mrb[11].mxu0 }
 0x33b   :  { %4486 = vmatprep.mubr.msk.f32.mxu1 %vm4584_vm0, %v4585_v4  ;;  %4494 = vmatprep.subr.mxu1 %v4585_v4  ;;  %v4331_v3 = vld [vmem:[%s6386_s12 + $0x73] ss:$0 sm:$0xff] }
 0x33d   :  { %4487 = vmatmul.mubr.msk.f32.vlgmr.msra.gmra.mrb[22].mxu1 %vm345_vm3, %v4986_v14  ;;  %v5345_v29 = vpop.permute.xlu0 %838 }
 0x33e   :  { %3031 = vperm.xlu0 %4577, %v4213_v8   ;;  %4495 = vmatpush3.msra.mxu1 %v892_v9  ;;  %v5386_v8 = vpop.f32.mrb[12].mxu0 }
 0x33f   :  { %4496 = vmatprep.mubr.msk.f32.mxu1 %vm4584_vm0, %v4585_v4  ;;  %4504 = vmatprep.subr.mxu1 %v4585_v4  ;;  %v4503_v9 = vpop.f32.mrb[13].mxu0 }
 0x341   :  { %4497 = vmatmul.mubr.msk.f32.vlgmr.msra.gmra.mrb[24].mxu1 %vm345_vm3, %v4986_v14  ;;  %v5353_v33 = vpop.permute.xlu0 %846 }
 0x342   :  { %3039 = vperm.xlu0 %4577, %v4215_v12   ;;  %4505 = vmatpush3.msra.mxu1 %v894_v15  ;;  %v4279_v12 = vld [vmem:[%s6386_s12 + $0x5f] ss:$0 sm:$0xff]  ;;  %v5391_v15 = vpop.f32.mrb[14].mxu0 }
 0x343   :  { %4506 = vmatprep.mubr.msk.f32.mxu1 %vm4584_vm0, %v4585_v4  ;;  %4514 = vmatprep.subr.mxu1 %v4585_v4 }
 0x345   :  { %4507 = vmatmul.mubr.msk.f32.vlgmr.msra.gmra.mrb[26].mxu1 %vm345_vm3, %v4986_v14  ;;  %v5358_v36 = vpop.permute.xlu0 %2308 }
 0x346   :  { %3208 = vperm.xlu0 %4577, %v4233_v16   ;;  %4515 = vmatpush3.msra.mxu1 %v896_v17  ;;  %6542 = vst [vmem:[#allocation17_spill] sm:$0xff] %v5358_v36  ;;  %v4513_v17 = vpop.f32.mrb[15].mxu0 }
 0x347   :  { %4516 = vmatprep.mubr.msk.f32.mxu1 %vm4584_vm0, %v4585_v4  ;;  %v4241_v4 = vld [vmem:[%s6386_s12 + $0x49] ss:$0 sm:$0xff]  ;;  %v4335_v17 = vld [vmem:[%s6386_s12 + $0x77] ss:$0 sm:$0xff] }
 0x349   :  { %4517 = vmatmul.mubr.msk.f32.vlgmr.msra.gmra.mrb[28].mxu1 %vm345_vm3, %v4986_v14  ;;  %v4243_v14 = vld [vmem:[%s6386_s12 + $0x4b] ss:$0 sm:$0xff]  ;;  %v5370_v48 = vpop.permute.xlu0 %2316 }
 0x34a   :  { %3216 = vperm.xlu0 %4577, %v4235_v20   ;;  %6543 = vst [vmem:[#allocation18_spill] sm:$0xff] %v5370_v48  ;;  %v4297_v20 = vld [vmem:[%s6386_s12 + $0x61] ss:$0 sm:$0xff] }
 0x34d   :  { %v5379_v62 = vpop.permute.xlu0 %2324 }
 0x34e   :  { %3224 = vperm.xlu0 %4577, %v4237_v21   ;;  %6544 = vst [vmem:[#allocation19_spill] sm:$0xff] %v5379_v62 }
 0x351   :  { %v5393_v16 = vpop.permute.xlu0 %2332 }
 0x352   :  { %3232 = vperm.xlu0 %4577, %v4239_v23   ;;  %6545 = vst [vmem:[#allocation20_spill] sm:$0xff] %v5393_v16 }
 0x355   :  { %v5400_v23 = vpop.permute.xlu0 %2340 }
 0x356   :  { %3240 = vperm.xlu0 %4577, %v4241_v4   ;;  %6546 = vst [vmem:[#allocation21_spill] sm:$0xff] %v5400_v23 }
 0x35a   :  { %3248 = vperm.xlu0 %4577, %v4243_v14   ;;  %v4299_v14 = vld [vmem:[%s6386_s12 + $0x63] ss:$0 sm:$0xff] }
 0x35e   :  { %3256 = vperm.xlu0 %4577, %v4245_v25   ;;  %v2037_v25 = vld [vmem:[%s6392_s11] sm:$0xff] }
 0x35f   :  { %4519 = vmatprep.subr.mxu0 %v2037_v25  ;;  %4569 = vmatprep.subr.mxu1 %v2037_v25 }
 0x360   :  { %4520 = vmatpush3.msra.mxu0 %v2037_v25  ;;  %4570 = vmatpush3.msra.mxu1 %v2037_v25  ;;  %v4339_v25 = vld [vmem:[%s6386_s12 + $0x7b] ss:$0 sm:$0xff] }
 0x362   :  { %3264 = vperm.xlu0 %4577, %v4247_v28   ;;  %v4301_v28 = vld [vmem:[%s6386_s12 + $0x65] ss:$0 sm:$0xff] }
 0x366   :  { %3433 = vperm.xlu0 %4577, %v4265_v31   ;;  %v5411_v31 = vpop.permute.xlu0 %2348 }
 0x367   :  { %6547 = vst [vmem:[#allocation22_spill] sm:$0xff] %v5411_v31 }
 0x36a   :  { %3441 = vperm.xlu0 %4577, %v4267_v32   ;;  %v4303_v32 = vld [vmem:[%s6386_s12 + $0x67] ss:$0 sm:$0xff] }
 0x36e   :  { %3449 = vperm.xlu0 %4577, %v4269_v35   ;;  %v5416_v35 = vpop.permute.xlu0 %2356 }
 0x36f   :  { %6548 = vst [vmem:[#allocation23_spill] sm:$0xff] %v5416_v35 }
 0x372   :  { %3457 = vperm.xlu0 %4577, %v4271_v39   ;;  %v4305_v39 = vld [vmem:[%s6386_s12 + $0x69] ss:$0 sm:$0xff] }
 0x376   :  { %3465 = vperm.xlu0 %4577, %v4273_v45   ;;  %v5424_v45 = vpop.permute.xlu0 %2364 }
 0x377   :  { %6549 = vst [vmem:[#allocation24_spill] sm:$0xff] %v5424_v45 }
 0x37a   :  { %3473 = vperm.xlu0 %4577, %v4275_v54   ;;  %v5429_v52 = vpop.permute.xlu0 %2533  ;;  %v4311_v54 = vld [vmem:[%s6386_s12 + $0x6f] ss:$0 sm:$0xff] }
 0x37b   :  { %6550 = vst [vmem:[#allocation25_spill] sm:$0xff] %v5429_v52 }
 0x37e   :  { %3481 = vperm.xlu0 %4577, %v4277_v2   ;;  %v5437_v2 = vpop.permute.xlu0 %2541 }
 0x37f   :  { %6551 = vst [vmem:[#allocation26_spill] sm:$0xff] %v5437_v2 }
 0x382   :  { %3489 = vperm.xlu0 %4577, %v4279_v12   ;;  %v5442_v9 = vpop.permute.xlu0 %2549  ;;  %v4333_v12 = vld [vmem:[%s6386_s12 + $0x75] ss:$0 sm:$0xff] }
 0x383   :  { %6552 = vst [vmem:[#allocation27_spill] sm:$0xff] %v5442_v9 }
 0x385   :  { %v5398_v21 = vpop.f32.mrb[8].mxu1 }
 0x386   :  { %3658 = vperm.xlu0 %4577, %v4297_v20   ;;  %v4433_v4 = vpop.f32.mrb[9].mxu1  ;;  %v5450_v20 = vpop.permute.xlu0 %2557  ;;  %v666_v11 = vmul.f32 %v4938_v60, %v5398_v21 }
 0x387   :  { %6553 = vst [vmem:[#allocation28_spill] sm:$0xff] %v5450_v20  ;;  %v4337_v4 = vld [vmem:[%s6386_s12 + $0x79] ss:$0 sm:$0xff] }
 0x38a   :  { %3666 = vperm.xlu0 %4577, %v4299_v14   ;;  %v5455_v14 = vpop.permute.xlu0 %2565 }
 0x38b   :  { %6554 = vst [vmem:[#allocation29_spill] sm:$0xff] %v5455_v14 }
 0x38e   :  { %3674 = vperm.xlu0 %4577, %v4301_v28   ;;  %v4341_v28 = vld [vmem:[%s6386_s12 + $0x7d] ss:$0 sm:$0xff] }
 0x392   :  { %3682 = vperm.xlu0 %4577, %v4303_v32   ;;  %v5463_v32 = vpop.permute.xlu0 %2573 }
 0x393   :  { %6555 = vst [vmem:[#allocation30_spill] sm:$0xff] %v5463_v32 }
 0x396   :  { %3690 = vperm.xlu0 %4577, %v4305_v39   ;;  %v4343_v39 = vld [vmem:[%s6386_s12 + $0x7f] ss:$0 sm:$0xff] }
 0x39a   :  { %3698 = vperm.xlu0 %4577, %v4307_v41   ;;  %v5468_v41 = vpop.permute.xlu0 %2581 }
 0x39b   :  { %6556 = vst [vmem:[#allocation31_spill] sm:$0xff] %v5468_v41 }
 0x39e   :  { %3706 = vperm.xlu0 %4577, %v4309_v50   ;;  %v5470_v50 = vpop.permute.xlu1 %2585 }
 0x39f   :  { %6557 = vst [vmem:[#allocation32_spill] sm:$0xff] %v5470_v50 }
 0x3a2   :  { %3714 = vperm.xlu0 %4577, %v4311_v54   ;;  %v5474_v54 = vcombine.high %v5398_v21, %v5398_v21 }
 0x3a4   :  { %v669_v50 = vmul.f32 %v4920_v53, %v5474_v54  ;;  %v671_v41 = vmul.f32 %v5211_v40, %v5474_v54  ;;  %v673_v18 = vmul.f32 %v5219_v44, %v5474_v54  ;;  %v668_v14 = vmul.f32 %v5206_v37, %v5474_v54 }
 0x3a5   :  { %v670_v6 = vmul.f32 %v4925_v55, %v5474_v54 }
 0x3a6   :  { %3883 = vperm.xlu0 %4577, %v4329_v59   ;;  %v5476_v59 = vpop.permute.xlu0 %2589 }
 0x3a7   :  { %6558 = vst [vmem:[#allocation33_spill] sm:$0xff] %v5476_v59  ;;  %v667_v59 = vmul.f32 %v5198_v34, %v5474_v54 }
 0x3aa   :  { %3891 = vperm.xlu0 %4577, %v4331_v3   ;;  %v659_v3 = vmul.f32 %v5198_v34, %v5398_v21  ;;  %v672_v34 = vmul.f32 %v4933_v58, %v5474_v54 }
 0x3ae   :  { %3899 = vperm.xlu0 %4577, %v4333_v12   ;;  %v660_v12 = vmul.f32 %v5206_v37, %v5398_v21 }
 0x3b2   :  { %3907 = vperm.xlu0 %4577, %v4335_v17   ;;  %v661_v17 = vmul.f32 %v4920_v53, %v5398_v21  ;;  %v5508_v53 = vpop.permute.xlu1 %2754 }
 0x3b3   :  { %6559 = vst [vmem:[#allocation34_spill] sm:$0xff] %v5508_v53 }
 0x3b6   :  { %3915 = vperm.xlu0 %4577, %v4337_v4   ;;  %v662_v4 = vmul.f32 %v4925_v55, %v5398_v21 }
 0x3ba   :  { %3923 = vperm.xlu0 %4577, %v4339_v25   ;;  %v663_v25 = vmul.f32 %v5211_v40, %v5398_v21 }
 0x3be   :  { %3931 = vperm.xlu0 %4577, %v4341_v28   ;;  %v664_v28 = vmul.f32 %v4933_v58, %v5398_v21 }
 0x3c2   :  { %3939 = vperm.xlu0 %4577, %v4343_v39   ;;  %v665_v39 = vmul.f32 %v5219_v44, %v5398_v21  ;;  %v5513_v21 = vpop.permute.xlu0 %2758 }
 0x3c3   :  { %6560 = vst [vmem:[#allocation35_spill] sm:$0xff] %v5513_v21 }
 0x3f8   :  { %v761_v32 = vpop.f32.mrb[10].mxu1 }
 0x3f9   :  { %v766_v20 = vcombine.high %v761_v32, %v761_v32  ;;  %v4438_v40 = vpop.f32.mrb[11].mxu1  ;;  %v849_v61 = vmul.f32 %v4946_v63, %v761_v32  ;;  %v850_v44 = vmul.f32 %v5332_v24, %v761_v32  ;;  %v851_v9 = vmul.f32 %v4951_v1, %v761_v32 }
 0x3fa   :  { %v852_v37 = vmul.f32 %v5340_v27, %v761_v32  ;;  %v853_v56 = vmul.f32 %v4959_v5, %v761_v32  ;;  %v854_v55 = vmul.f32 %v5345_v29, %v761_v32  ;;  %v855_v58 = vmul.f32 %v4964_v7, %v761_v32 }
 0x3fb   :  { %v857_v2 = vmul.f32 %v4946_v63, %v766_v20  ;;  %v859_v40 = vmul.f32 %v4951_v1, %v766_v20  ;;  %v865_v49 = vadd.f32 %v849_v61, %v659_v3  ;;  %v861_v52 = vmul.f32 %v4959_v5, %v766_v20  ;;  %v5524_v1 = vpop.permute.xlu1 %2762 }
 0x3fc   :  { %v967_v46 = vpop.f32.mrb[12].mxu1  ;;  %v863_v45 = vmul.f32 %v4964_v7, %v766_v20  ;;  %v866_v42 = vadd.f32 %v850_v44, %v660_v12  ;;  %v867_v35 = vadd.f32 %v851_v9, %v661_v17  ;;  %v868_v38 = vadd.f32 %v852_v37, %v662_v4  ;;  %6561 = vst [vmem:[#allocation36_spill] sm:$0xff] %v5524_v1  ;;  %v5532_v9 = vpop.permute.xlu0 %2766 }
 0x3fd   :  { %v873_v31 = vadd.f32 %v857_v2, %v667_v59  ;;  %v875_v30 = vadd.f32 %v859_v40, %v669_v50  ;;  %v2021_v23 = vadd.f32 %v967_v46, %v865_v49  ;;  %v877_v26 = vadd.f32 %v861_v52, %v671_v41  ;;  %v4443_v16 = vpop.f32.mrb[13].mxu1  ;;  %6562 = vst [vmem:[#allocation37_spill] sm:$0xff] %v5532_v9 }
 0x3fe   :  { %v879_v22 = vadd.f32 %v863_v45, %v673_v18  ;;  %v2023_v62 = vadd.f32 %v5363_v43, %v867_v35  ;;  %v869_v63 = vadd.f32 %v853_v56, %v663_v25  ;;  %v870_v19 = vadd.f32 %v854_v55, %v664_v28 }
 0x3ff   :  { %v2029_v5 = vadd.f32 %v5377_v57, %v873_v31  ;;  %v2031_v61 = vadd.f32 %v5381_v0, %v875_v30  ;;  %v5529_v7 = vadd.f32 %v5386_v8, %v877_v26  ;;  %v856_v2 = vmul.f32 %v5353_v33, %v761_v32 }
 0x400   :  { %v5535_v46 = vadd.f32 %v5391_v15, %v879_v22  ;;  %v1037_v49 = vpop.f32.mrb[14].mxu1  ;;  %v2025_v56 = vadd.f32 %v5368_v47, %v869_v63  ;;  %v871_v18 = vadd.f32 %v855_v58, %v665_v39  ;;  %v858_v43 = vmul.f32 %v5332_v24, %v766_v20 }
 0x401   :  { %v2022_v16 = vadd.f32 %v1037_v49, %v866_v42  ;;  %v4448_v57 = vpop.f32.mrb[15].mxu1  ;;  %v872_v31 = vadd.f32 %v856_v2, %v666_v11  ;;  %v860_v30 = vmul.f32 %v5340_v27, %v766_v20  ;;  %v862_v26 = vmul.f32 %v5345_v29, %v766_v20  ;;  %v5545_v42 = vpop.permute.xlu1 %2770 }
 0x402   :  { %v2027_v0 = vadd.f32 %v5372_v51, %v871_v18  ;;  %v874_v8 = vadd.f32 %v858_v43, %v668_v14  ;;  %v674_v22 = vmul.f32 %v4938_v60, %v5474_v54  ;;  %v864_v15 = vmul.f32 %v5353_v33, %v766_v20  ;;  %6563 = vst [vmem:[#allocation38_spill] sm:$0xff] %v5545_v42  ;;  %v5548_v27 = vpop.permute.xlu0 %2774 }
 0x403   :  { %v2054_v35 = vcombine.low %v2021_v23, %v2022_v16  ;;  %v876_v47 = vadd.f32 %v860_v30, %v670_v6  ;;  %v878_v45 = vadd.f32 %v862_v26, %v672_v34  ;;  %6564 = vst [vmem:[#allocation39_spill] sm:$0xff] %v5548_v27 }
 0x404   :  { %v1177_v52 = vpop.f32.mrb[16].mxu1  ;;  %v880_v24 = vadd.f32 %v864_v15, %v674_v22 }
 0x405   :  { %v2024_v11 = vadd.f32 %v1177_v52, %v868_v38  ;;  %v4458_v32 = vpop.f32.mrb[17].mxu1  ;;  %4521 = vmatprep.mubr.msk.f32.mxu0 %vm345_vm3, %v2054_v35  ;;  %v5551_v60 = vpop.permute.xlu1 %2778 }
 0x406   :  { %6565 = vst [vmem:[#allocation40_spill] sm:$0xff] %v5551_v60  ;;  %v5553_v33 = vpop.permute.xlu0 %2782 }
 0x407   :  { %v2055_v29 = vcombine.low %v2023_v62, %v2024_v11  ;;  %6566 = vst [vmem:[#allocation41_spill] sm:$0xff] %v5553_v33 }
 0x408   :  { %v1317_v51 = vpop.f32.mrb[18].mxu1 }
 0x409   :  { %v2026_v14 = vadd.f32 %v1317_v51, %v870_v19  ;;  %v4468_v41 = vpop.f32.mrb[19].mxu1  ;;  %4522 = vmatmul.mubr.msk.f32.vlgmr.msra.gmra.mrb[16].mxu0 %vm345_vm3, %v2055_v29  ;;  %v5556_v59 = vpop.permute.xlu1 %2786 }
 0x40a   :  { %6567 = vst [vmem:[#allocation42_spill] sm:$0xff] %v5556_v59  ;;  %v5559_v19 = vpop.permute.xlu0 %2790 }
 0x40b   :  { %v2056_v6 = vcombine.low %v2025_v56, %v2026_v14  ;;  %6568 = vst [vmem:[#allocation43_spill] sm:$0xff] %v5559_v19 }
 0x40c   :  { %v1457_v23 = vpop.f32.mrb[20].mxu1 }
 0x40d   :  { %v2028_v20 = vadd.f32 %v1457_v23, %v872_v31  ;;  %v4478_v50 = vpop.f32.mrb[21].mxu1  ;;  %4524 = vmatprep.mubr.msk.f32.mxu0 %vm345_vm3, %v2056_v6  ;;  %v5562_v28 = vpop.permute.xlu1 %2794 }
 0x40e   :  { %6569 = vst [vmem:[#allocation44_spill] sm:$0xff] %v5562_v28  ;;  %v5564_v34 = vpop.permute.xlu0 %2798 }
 0x40f   :  { %v2057_v38 = vcombine.low %v2027_v0, %v2028_v20  ;;  %6570 = vst [vmem:[#allocation45_spill] sm:$0xff] %v5564_v34 }
 0x410   :  { %v1597_v54 = vpop.f32.mrb[22].mxu1 }
 0x411   :  { %v2030_v62 = vadd.f32 %v1597_v54, %v874_v8  ;;  %v4488_v3 = vpop.f32.mrb[23].mxu1  ;;  %4525 = vmatmul.mubr.msk.f32.gmra.mrb[18].mxu0 %vm345_vm3, %v2057_v38  ;;  %v5568_v63 = vpop.permute.xlu1 %2802 }
 0x412   :  { %6571 = vst [vmem:[#allocation46_spill] sm:$0xff] %v5568_v63  ;;  %v5571_v49 = vpop.permute.xlu0 %2806 }
 0x413   :  { %v2058_v12 = vcombine.low %v2029_v5, %v2030_v62  ;;  %6572 = vst [vmem:[#allocation47_spill] sm:$0xff] %v5571_v49 }
 0x414   :  { %v1737_v17 = vpop.f32.mrb[24].mxu1 }
 0x415   :  { %v2032_v4 = vadd.f32 %v1737_v17, %v876_v47  ;;  %v4498_v25 = vpop.f32.mrb[25].mxu1  ;;  %4527 = vmatprep.mubr.msk.f32.mxu1 %vm345_vm3, %v2058_v12  ;;  %v5575_v56 = vpop.permute.xlu1 %2810 }
 0x416   :  { %6573 = vst [vmem:[#allocation48_spill] sm:$0xff] %v5575_v56  ;;  %v5577_v18 = vpop.permute.xlu0 %2814 }
 0x417   :  { %v2059_v39 = vcombine.low %v2031_v61, %v2032_v4  ;;  %6574 = vst [vmem:[#allocation49_spill] sm:$0xff] %v5577_v18 }
 0x418   :  { %v1877_v44 = vpop.f32.mrb[26].mxu1 }
 0x419   :  { %v2034_v37 = vadd.f32 %v1877_v44, %v878_v45  ;;  %v4508_v55 = vpop.f32.mrb[27].mxu1  ;;  %4528 = vmatmul.mubr.msk.f32.vlgmr.msra.gmra.mrb[30].mxu1 %vm345_vm3, %v2059_v39  ;;  %v5579_v43 = vpop.permute.xlu1 %2979 }
 0x41a   :  { %6575 = vst [vmem:[#allocation50_spill] sm:$0xff] %v5579_v43 }
 0x41b   :  { %v2060_v58 = vcombine.low %v5529_v7, %v2034_v37  ;;  %v5581_v7 = vpop.permute.xlu0 %2983 }
 0x41c   :  { %v2017_v40 = vpop.f32.mrb[28].mxu1  ;;  %6576 = vst [vmem:[#allocation51_spill] sm:$0xff] %v5581_v7 }
 0x41d   :  { %v2036_v5 = vadd.f32 %v2017_v40, %v880_v24  ;;  %v4518_v2 = vpop.f32.mrb[29].mxu1  ;;  %4530 = vmatprep.mubr.msk.f32.mxu1 %vm345_vm3, %v2060_v58  ;;  %v5583_v16 = vpop.permute.xlu1 %2987 }
 0x41e   :  { %6577 = vst [vmem:[#allocation52_spill] sm:$0xff] %v5583_v16 }
 0x41f   :  { %v2061_v61 = vcombine.low %v5535_v46, %v2036_v5  ;;  %v5585_v57 = vpop.permute.xlu0 %2991 }
 0x420   :  { %6578 = vst [vmem:[#allocation53_spill] sm:$0xff] %v5585_v57 }
 0x421   :  { %4531 = vmatmul.mubr.msk.f32.gmra.mrb[32].mxu1 %vm345_vm3, %v2061_v61  ;;  %v5587_v31 = vpop.permute.xlu1 %2995 }
 0x422   :  { %6579 = vst [vmem:[#allocation54_spill] sm:$0xff] %v5587_v31  ;;  %v6674_v31 = vld [vmem:[#allocation33_spill] sm:$0xff] }
 0x423   :  { %v5589_v30 = vpop.permute.xlu0 %2999 }
 0x424   :  { %6580 = vst [vmem:[#allocation55_spill] sm:$0xff] %v5589_v30 }
 0x425   :  { %v5591_v26 = vpop.permute.xlu1 %3003 }
 0x426   :  { %6581 = vst [vmem:[#allocation56_spill] sm:$0xff] %v5591_v26  ;;  %v6671_v26 = vld [vmem:[#allocation31_spill] sm:$0xff] }
 0x427   :  { %v5593_v46 = vpop.permute.xlu0 %3007 }
 0x428   :  { %6582 = vst [vmem:[#allocation57_spill] sm:$0xff] %v5593_v46  ;;  %v6670_v46 = vld [vmem:[#allocation16_spill] sm:$0xff] }
 0x429   :  { %v5595_v0 = vpop.permute.xlu1 %3011 }
 0x42a   :  { %6583 = vst [vmem:[#allocation58_spill] sm:$0xff] %v5595_v0  ;;  %v6666_v0 = vld [vmem:[#allocation15_spill] sm:$0xff] }
 0x42b   :  { %v5597_v8 = vpop.permute.xlu0 %3015 }
 0x42c   :  { %6584 = vst [vmem:[#allocation59_spill] sm:$0xff] %v5597_v8  ;;  %v6665_v8 = vld [vmem:[#allocation29_spill] sm:$0xff] }
 0x42d   :  { %v5599_v22 = vpop.permute.xlu1 %3019 }
 0x42e   :  { %6585 = vst [vmem:[#allocation60_spill] sm:$0xff] %v5599_v22 }
 0x42f   :  { %v5601_v15 = vpop.permute.xlu0 %3023 }
 0x430   :  { %6586 = vst [vmem:[#allocation61_spill] sm:$0xff] %v5601_v15  ;;  %v6660_v15 = vld [vmem:[#allocation13_spill] sm:$0xff] }
 0x431   :  { %v5603_v35 = vpop.permute.xlu1 %3027 }
 0x432   :  { %6587 = vst [vmem:[#allocation62_spill] sm:$0xff] %v5603_v35  ;;  %v6659_v35 = vld [vmem:[#allocation27_spill] sm:$0xff] }
 0x433   :  { %v5605_v47 = vpop.permute.xlu0 %3031 }
 0x434   :  { %6588 = vst [vmem:[#allocation63_spill] sm:$0xff] %v5605_v47  ;;  %v6658_v47 = vld [vmem:[#allocation12_spill] sm:$0xff] }
 0x435   :  { %v5607_v45 = vpop.permute.xlu1 %3035 }
 0x436   :  { %6589 = vst [vmem:[#allocation64_spill] sm:$0xff] %v5607_v45 }
 0x437   :  { %v5609_v52 = vpop.permute.xlu0 %3039 }
 0x438   :  { %6590 = vst [vmem:[#allocation65_spill] sm:$0xff] %v5609_v52  ;;  %v6655_v52 = vld [vmem:[#allocation11_spill] sm:$0xff] }
 0x439   :  { %v5611_v24 = vpop.permute.xlu1 %3204 }
 0x43a   :  { %6591 = vst [vmem:[#allocation66_spill] sm:$0xff] %v5611_v24  ;;  %v6654_v24 = vld [vmem:[#allocation25_spill] sm:$0xff] }
 0x43b   :  { %v5613_v11 = vpop.permute.xlu0 %3208 }
 0x43c   :  { %6592 = vst [vmem:[#allocation67_spill] sm:$0xff] %v5613_v11  ;;  %v6653_v11 = vld [vmem:[#allocation10_spill] sm:$0xff] }
 0x43d   :  { %v5615_v32 = vpop.permute.xlu1 %3212 }
 0x43e   :  { %6593 = vst [vmem:[#allocation68_spill] sm:$0xff] %v5615_v32  ;;  %v6652_v32 = vld [vmem:[#allocation24_spill] sm:$0xff] }
 0x43f   :  { %v5617_v29 = vpop.permute.xlu0 %3216 }
 0x440   :  { %6594 = vst [vmem:[#allocation69_spill] sm:$0xff] %v5617_v29  ;;  %v6651_v29 = vld [vmem:[#allocation9_spill] sm:$0xff] }
 0x441   :  { %v5619_v51 = vpop.permute.xlu1 %3220 }
 0x442   :  { %6595 = vst [vmem:[#allocation70_spill] sm:$0xff] %v5619_v51  ;;  %v6650_v51 = vld [vmem:[#allocation23_spill] sm:$0xff] }
 0x443   :  { %v5621_v14 = vpop.permute.xlu0 %3224 }
 0x444   :  { %6596 = vst [vmem:[#allocation71_spill] sm:$0xff] %v5621_v14  ;;  %v6649_v14 = vld [vmem:[#allocation8_spill] sm:$0xff] }
 0x445   :  { %v5623_v41 = vpop.permute.xlu1 %3228 }
 0x446   :  { %6597 = vst [vmem:[#allocation72_spill] sm:$0xff] %v5623_v41  ;;  %v6648_v41 = vld [vmem:[#allocation22_spill] sm:$0xff] }
 0x447   :  { %v5625_v6 = vpop.permute.xlu0 %3232 }
 0x448   :  { %6598 = vst [vmem:[#allocation73_spill] sm:$0xff] %v5625_v6  ;;  %v6647_v6 = vld [vmem:[#allocation7_spill] sm:$0xff] }
 0x449   :  { %v5627_v23 = vpop.permute.xlu1 %3236 }
 0x44a   :  { %6599 = vst [vmem:[#allocation74_spill] sm:$0xff] %v5627_v23 }
 0x44b   :  { %v5629_v20 = vpop.permute.xlu0 %3240 }
 0x44c   :  { %6600 = vst [vmem:[#allocation75_spill] sm:$0xff] %v5629_v20 }
 0x44d   :  { %v5631_v50 = vpop.permute.xlu1 %3244 }
 0x44e   :  { %6601 = vst [vmem:[#allocation76_spill] sm:$0xff] %v5631_v50  ;;  %v6645_v50 = vld [vmem:[#allocation6_spill] sm:$0xff] }
 0x44f   :  { %v5633_v38 = vpop.permute.xlu0 %3248 }
 0x450   :  { %6602 = vst [vmem:[#allocation77_spill] sm:$0xff] %v5633_v38  ;;  %v6644_v38 = vld [vmem:[#allocation20_spill] sm:$0xff] }
 0x451   :  { %v5635_v54 = vpop.permute.xlu1 %3252 }
 0x452   :  { %6603 = vst [vmem:[#allocation78_spill] sm:$0xff] %v5635_v54 }
 0x453   :  { %v5637_v62 = vpop.permute.xlu0 %3256 }
 0x454   :  { %6604 = vst [vmem:[#allocation79_spill] sm:$0xff] %v5637_v62  ;;  %v6643_v62 = vld [vmem:[#allocation5_spill] sm:$0xff] }
 0x455   :  { %v5639_v3 = vpop.permute.xlu1 %3260 }
 0x456   :  { %6605 = vst [vmem:[#allocation80_spill] sm:$0xff] %v5639_v3  ;;  %v6642_v3 = vld [vmem:[#allocation19_spill] sm:$0xff] }
 0x457   :  { %v5641_v12 = vpop.permute.xlu0 %3264 }
 0x458   :  { %6606 = vst [vmem:[#allocation81_spill] sm:$0xff] %v5641_v12 }
 0x459   :  { %v5643_v17 = vpop.permute.xlu1 %3429 }
 0x45a   :  { %6607 = vst [vmem:[#allocation82_spill] sm:$0xff] %v5643_v17  ;;  %v6641_v17 = vld [vmem:[#allocation4_spill] sm:$0xff] }
 0x45b   :  { %v5645_v4 = vpop.permute.xlu0 %3433 }
 0x45c   :  { %6608 = vst [vmem:[#allocation83_spill] sm:$0xff] %v5645_v4 }
 0x45d   :  { %v5647_v25 = vpop.permute.xlu1 %3437 }
 0x45e   :  { %6609 = vst [vmem:[#allocation84_spill] sm:$0xff] %v5647_v25 }
 0x45f   :  { %v5649_v39 = vpop.permute.xlu0 %3441 }
 0x460   :  { %6610 = vst [vmem:[#allocation85_spill] sm:$0xff] %v5649_v39 }
 0x461   :  { %v5651_v44 = vpop.permute.xlu1 %3445 }
 0x462   :  { %6611 = vst [vmem:[#allocation86_spill] sm:$0xff] %v5651_v44 }
 0x463   :  { %v5653_v37 = vpop.permute.xlu0 %3449 }
 0x464   :  { %6612 = vst [vmem:[#allocation87_spill] sm:$0xff] %v5653_v37 }
 0x465   :  { %v5655_v55 = vpop.permute.xlu1 %3453 }
 0x466   :  { %6613 = vst [vmem:[#allocation88_spill] sm:$0xff] %v5655_v55 }
 0x467   :  { %v5657_v58 = vpop.permute.xlu0 %3457 }
 0x468   :  { %6614 = vst [vmem:[#allocation89_spill] sm:$0xff] %v5657_v58 }
 0x469   :  { %v5659_v40 = vpop.permute.xlu1 %3461 }
 0x46a   :  { %6615 = vst [vmem:[#allocation90_spill] sm:$0xff] %v5659_v40 }
 0x46b   :  { %v5661_v5 = vpop.permute.xlu0 %3465 }
 0x46c   :  { %6616 = vst [vmem:[#allocation91_spill] sm:$0xff] %v5661_v5 }
 0x46d   :  { %v5663_v2 = vpop.permute.xlu1 %3469 }
 0x46e   :  { %6617 = vst [vmem:[#allocation92_spill] sm:$0xff] %v5663_v2 }
 0x46f   :  { %v5665_v61 = vpop.permute.xlu0 %3473 }
 0x470   :  { %6618 = vst [vmem:[#allocation93_spill] sm:$0xff] %v5665_v61 }
 0x471   :  { %v5667_v4 = vpop.permute.xlu1 %3477 }
 0x472   :  { %6619 = vst [vmem:[#allocation94_spill] sm:$0xff] %v5667_v4 }
 0x473   :  { %v5669_v25 = vpop.permute.xlu0 %3481 }
 0x474   :  { %6620 = vst [vmem:[#allocation95_spill] sm:$0xff] %v5669_v25 }
 0x475   :  { %v5671_v39 = vpop.permute.xlu1 %3485 }
 0x476   :  { %6621 = vst [vmem:[#allocation96_spill] sm:$0xff] %v5671_v39 }
 0x477   :  { %v5673_v44 = vpop.permute.xlu0 %3489 }
 0x478   :  { %6622 = vst [vmem:[#allocation97_spill] sm:$0xff] %v5673_v44 }
 0x479   :  { %v5675_v37 = vpop.permute.xlu1 %3654 }
 0x47a   :  { %6623 = vst [vmem:[#allocation98_spill] sm:$0xff] %v5675_v37 }
 0x47b   :  { %v5677_v55 = vpop.permute.xlu0 %3658 }
 0x47c   :  { %6624 = vst [vmem:[#allocation99_spill] sm:$0xff] %v5677_v55 }
 0x47d   :  { %v5679_v58 = vpop.permute.xlu1 %3662 }
 0x47e   :  { %6625 = vst [vmem:[#allocation100_spill] sm:$0xff] %v5679_v58 }
 0x47f   :  { %v5681_v40 = vpop.permute.xlu0 %3666 }
 0x480   :  { %6626 = vst [vmem:[#allocation101_spill] sm:$0xff] %v5681_v40 }
 0x481   :  { %v5683_v5 = vpop.permute.xlu1 %3670 }
 0x482   :  { %6627 = vst [vmem:[#allocation102_spill] sm:$0xff] %v5683_v5 }
 0x483   :  { %v5685_v2 = vpop.permute.xlu0 %3674 }
 0x484   :  { %6628 = vst [vmem:[#allocation103_spill] sm:$0xff] %v5685_v2 }
 0x485   :  { %v5687_v61 = vpop.permute.xlu1 %3678 }
 0x486   :  { %6629 = vst [vmem:[#allocation104_spill] sm:$0xff] %v5687_v61 }
 0x487   :  { %v5689_v4 = vpop.permute.xlu0 %3682 }
 0x488   :  { %6630 = vst [vmem:[#allocation105_spill] sm:$0xff] %v5689_v4 }
 0x489   :  { %v5691_v25 = vpop.permute.xlu1 %3686 }
 0x48a   :  { %6631 = vst [vmem:[#allocation106_spill] sm:$0xff] %v5691_v25 }
 0x48b   :  { %v5693_v39 = vpop.permute.xlu0 %3690 }
 0x48c   :  { %6632 = vst [vmem:[#allocation107_spill] sm:$0xff] %v5693_v39 }
 0x48d   :  { %v5695_v44 = vpop.permute.xlu1 %3694 }
 0x48e   :  { %6633 = vst [vmem:[#allocation108_spill] sm:$0xff] %v5695_v44 }
 0x48f   :  { %v5697_v37 = vpop.permute.xlu0 %3698 }
 0x490   :  { %6634 = vst [vmem:[#allocation109_spill] sm:$0xff] %v5697_v37 }
 0x491   :  { %v5701_v58 = vpop.permute.xlu1 %3702 }
 0x492   :  { %6635 = vst [vmem:[#allocation110_spill] sm:$0xff] %v5701_v58 }
 0x493   :  { %v5719_v44 = vpop.permute.xlu0 %3706 }
 0x494   :  { %6640 = vst [vmem:[#allocation115_spill] sm:$0xff] %v5719_v44  ;;  %v6646_v44 = vld [vmem:[#allocation21_spill] sm:$0xff] }
 0x495   :  { %v5740_v45 = vpop.permute.xlu1 %3710 }
 0x496   :  { %6656 = vst [vmem:[#allocation116_spill] sm:$0xff] %v5740_v45 }
 0x497   :  { %v5746_v22 = vpop.permute.xlu0 %3714 }
 0x498   :  { %6661 = vst [vmem:[#allocation117_spill] sm:$0xff] %v5746_v22 }
 0x499   :  { %v5769_v18 = vpop.permute.xlu1 %3879 }
 0x4dc   :  { %v5699_v55 = vpop.f32.mrb[16].mxu0 }
 0x4dd   :  { %v5705_v5 = vcombine.high %v5699_v55, %v5699_v55  ;;  %v2144_v2 = vpop.f32.mrb[17].mxu0  ;;  %v5709_v4 = vmul.f32 %v5699_v55, %v5508_v53  ;;  %v5713_v39 = vmul.f32 %v5699_v55, %v5513_v21  ;;  %v5717_v37 = vmul.f32 %v5699_v55, %v5524_v1 }
 0x4de   :  { %v2191_v58 = vcombine.high %v2144_v2, %v2144_v2  ;;  %v2367_v25 = vmul.f32 %v4972_v10, %v2144_v2  ;;  %v2368_v61 = vmul.f32 %v5358_v36, %v2144_v2  ;;  %v2369_v40 = vmul.f32 %v4981_v13, %v2144_v2 }
 0x4df   :  { %6636 = vst [vmem:[#allocation111_spill] sm:$0xff] %v5705_v5  ;;  %6637 = vst [vmem:[#allocation112_spill] sm:$0xff] %v5709_v4  ;;  %v2370_v53 = vmul.f32 %v5370_v48, %v2144_v2  ;;  %v2371_v12 = vmul.f32 %v6641_v17, %v2144_v2  ;;  %v2372_v21 = vmul.f32 %v6642_v3, %v2144_v2 }
 0x4e0   :  { %6638 = vst [vmem:[#allocation113_spill] sm:$0xff] %v5713_v39  ;;  %6639 = vst [vmem:[#allocation114_spill] sm:$0xff] %v5717_v37  ;;  %v2373_v54 = vmul.f32 %v6643_v62, %v2144_v2  ;;  %v2374_v1 = vmul.f32 %v6644_v38, %v2144_v2  ;;  %v2375_v20 = vmul.f32 %v6645_v50, %v2144_v2 }
 0x4e1   :  { %v2376_v23 = vmul.f32 %v6646_v44, %v2144_v2  ;;  %v2377_v10 = vmul.f32 %v6647_v6, %v2144_v2  ;;  %v2378_v36 = vmul.f32 %v6648_v41, %v2144_v2  ;;  %v2379_v13 = vmul.f32 %v6649_v14, %v2144_v2  ;;  %v6657_v44 = vld [vmem:[#allocation26_spill] sm:$0xff] }
 0x4e2   :  { %v2380_v48 = vmul.f32 %v6650_v51, %v2144_v2  ;;  %v2381_v17 = vmul.f32 %v6651_v29, %v2144_v2  ;;  %v2382_v3 = vmul.f32 %v6652_v32, %v2144_v2  ;;  %v2592_v62 = vmul.f32 %v6653_v11, %v2191_v58  ;;  %v6663_v2 = vld [vmem:[#allocation28_spill] sm:$0xff]  ;;  %v6664_v32 = vld [vmem:[#allocation14_spill] sm:$0xff] }
 0x4e3   :  { %v2593_v38 = vmul.f32 %v6654_v24, %v2191_v58  ;;  %v2594_v50 = vmul.f32 %v6655_v52, %v2191_v58  ;;  %v2595_v6 = vmul.f32 %v6657_v44, %v2191_v58  ;;  %v2596_v41 = vmul.f32 %v6658_v47, %v2191_v58 }
 0x4e4   :  { %v2597_v14 = vmul.f32 %v6659_v35, %v2191_v58  ;;  %v2598_v51 = vmul.f32 %v6660_v15, %v2191_v58  ;;  %v5748_v29 = vpop.f32.mrb[18].mxu0  ;;  %v2599_v11 = vmul.f32 %v6663_v2, %v2191_v58  ;;  %v2600_v24 = vmul.f32 %v6664_v32, %v2191_v58  ;;  %v6669_v35 = vld [vmem:[#allocation30_spill] sm:$0xff]  ;;  %v6673_v32 = vld [vmem:[#allocation32_spill] sm:$0xff] }
 0x4e5   :  { %6662 = vst [vmem:[#allocation118_spill] sm:$0xff] %v5748_v29  ;;  %v2601_v52 = vmul.f32 %v6665_v8, %v2191_v58  ;;  %v2602_v45 = vmul.f32 %v6666_v0, %v2191_v58  ;;  %v5756_v44 = vcombine.high %v5748_v29, %v5748_v29  ;;  %v5758_v47 = vpop.f32.mrb[19].mxu0  ;;  %v2603_v15 = vmul.f32 %v6669_v35, %v2191_v58 }
 0x4e6   :  { %6668 = vst [vmem:[#allocation120_spill] sm:$0xff] %v5758_v47  ;;  %v2604_v22 = vmul.f32 %v6670_v46, %v2191_v58  ;;  %v2605_v30 = vmul.f32 %v6671_v26, %v2191_v58  ;;  %v5765_v2 = vcombine.high %v5758_v47, %v5758_v47  ;;  %v2606_v8 = vmul.f32 %v6673_v32, %v2191_v58 }
 0x4e7   :  { %6667 = vst [vmem:[#allocation119_spill] sm:$0xff] %v5756_v44  ;;  %v2607_v0 = vmul.f32 %v6674_v31, %v2191_v58  ;;  %v2624_v57 = vadd.f32 %v2592_v62, %v2367_v25  ;;  %v2625_v16 = vadd.f32 %v2593_v38, %v2368_v61  ;;  %v2626_v29 = vadd.f32 %v2594_v50, %v2369_v40 }
 0x4e8   :  { %6672 = vst [vmem:[#allocation121_spill] sm:$0xff] %v5765_v2  ;;  %v2627_v44 = vadd.f32 %v2595_v6, %v2370_v53  ;;  %v2628_v7 = vadd.f32 %v2596_v41, %v2371_v12  ;;  %v2629_v43 = vadd.f32 %v2597_v14, %v2372_v21  ;;  %v2630_v5 = vadd.f32 %v2598_v51, %v2373_v54  ;;  %v5771_v2 = vpop.permute.xlu0 %3883  ;;  %v6679_v14 = vld [vmem:[#allocation113_spill] sm:$0xff]  ;;  %v6680_v6 = vld [vmem:[#allocation114_spill] sm:$0xff]  ;;  %v5806_v12 = vpop.permute.xlu1 %3887 }
 0x4e9   :  { %v2631_v35 = vadd.f32 %v2599_v11, %v2374_v1  ;;  %v2632_v37 = vadd.f32 %v2600_v24, %v2375_v20  ;;  %v2633_v46 = vadd.f32 %v2601_v52, %v2376_v23  ;;  %v2634_v39 = vadd.f32 %v2602_v45, %v2377_v10  ;;  %v6676_v45 = vld [vmem:[#allocation49_spill] sm:$0xff]  ;;  %v6678_v11 = vld [vmem:[#allocation112_spill] sm:$0xff] }
 0x4ea   :  { %v2635_v26 = vadd.f32 %v2603_v15, %v2378_v36  ;;  %v2636_v4 = vadd.f32 %v2604_v22, %v2379_v13  ;;  %v2637_v32 = vadd.f32 %v2605_v30, %v2380_v48  ;;  %v2638_v47 = vadd.f32 %v2606_v8, %v2381_v17 }
 0x4eb   :  { %v2639_v58 = vadd.f32 %v2607_v0, %v2382_v3  ;;  %v2820_v50 = vmul.f32 %v5699_v55, %v5532_v9  ;;  %v2821_v53 = vmul.f32 %v5699_v55, %v5545_v42  ;;  %v2822_v21 = vmul.f32 %v5699_v55, %v5548_v27 }
 0x4ec   :  { %v2823_v10 = vmul.f32 %v5699_v55, %v5551_v60  ;;  %v2824_v13 = vmul.f32 %v5699_v55, %v5553_v33  ;;  %v2825_v36 = vmul.f32 %v5699_v55, %v5556_v59  ;;  %v2826_v48 = vmul.f32 %v5699_v55, %v5559_v19  ;;  %v5791_v0 = vpop.f32.mrb[30].mxu1  ;;  %v5808_v17 = vpop.permute.xlu0 %3891  ;;  %v6701_v60 = vld [vmem:[#allocation66_spill] sm:$0xff] }
 0x4ed   :  { %v2827_v1 = vmul.f32 %v5699_v55, %v5562_v28  ;;  %v2828_v30 = vmul.f32 %v5699_v55, %v5564_v34  ;;  %6675 = vst [vmem:[#allocation122_spill] sm:$0xff] %v5791_v0  ;;  %v2829_v8 = vmul.f32 %v5699_v55, %v5568_v63  ;;  %v2830_v22 = vmul.f32 %v5699_v55, %v5571_v49  ;;  %v5801_v24 = vpop.f32.mrb[31].mxu1  ;;  %v6700_v33 = vld [vmem:[#allocation120_spill] sm:$0xff] }
 0x4ee   :  { %v2831_v15 = vmul.f32 %v5699_v55, %v5575_v56  ;;  %v2832_v52 = vmul.f32 %v5699_v55, %v6676_v45  ;;  %6677 = vst [vmem:[#allocation123_spill] sm:$0xff] %v5801_v24  ;;  %v2849_v51 = vadd.f32 %v6678_v11, %v2624_v57  ;;  %v2850_v41 = vadd.f32 %v6679_v14, %v2625_v16  ;;  %v6681_v16 = vld [vmem:[#allocation111_spill] sm:$0xff]  ;;  %v6682_v14 = vld [vmem:[#allocation50_spill] sm:$0xff] }
 0x4ef   :  { %v2851_v23 = vadd.f32 %v6680_v6, %v2626_v29  ;;  %v2852_v20 = vadd.f32 %v2820_v50, %v2627_v44  ;;  %v2853_v38 = vadd.f32 %v2821_v53, %v2628_v7  ;;  %v2854_v54 = vadd.f32 %v2822_v21, %v2629_v43  ;;  %v6683_v7 = vld [vmem:[#allocation51_spill] sm:$0xff]  ;;  %v6690_v53 = vld [vmem:[#allocation58_spill] sm:$0xff] }
 0x4f0   :  { %v2855_v62 = vadd.f32 %v2823_v10, %v2630_v5  ;;  %v2856_v3 = vadd.f32 %v2824_v13, %v2631_v35  ;;  %v2857_v25 = vadd.f32 %v2825_v36, %v2632_v37  ;;  %v2858_v40 = vadd.f32 %v2826_v48, %v2633_v46  ;;  %v6684_v35 = vld [vmem:[#allocation52_spill] sm:$0xff]  ;;  %v6685_v5 = vld [vmem:[#allocation53_spill] sm:$0xff]  ;;  %v6686_v46 = vld [vmem:[#allocation54_spill] sm:$0xff] }
 0x4f1   :  { %v2859_v55 = vadd.f32 %v2827_v1, %v2634_v39  ;;  %v2860_v61 = vadd.f32 %v2828_v30, %v2635_v26  ;;  %v2861_v45 = vadd.f32 %v2829_v8, %v2636_v4  ;;  %v2862_v56 = vadd.f32 %v2830_v22, %v2637_v32  ;;  %v6687_v26 = vld [vmem:[#allocation55_spill] sm:$0xff]  ;;  %v6689_v37 = vld [vmem:[#allocation57_spill] sm:$0xff]  ;;  %v6692_v36 = vld [vmem:[#allocation60_spill] sm:$0xff] }
 0x4f2   :  { %v2863_v57 = vadd.f32 %v2831_v15, %v2638_v47  ;;  %v2864_v11 = vadd.f32 %v2832_v52, %v2639_v58  ;;  %v3042_v29 = vmul.f32 %v6682_v14, %v6681_v16  ;;  %v3043_v43 = vmul.f32 %v6683_v7, %v6681_v16  ;;  %v6688_v47 = vld [vmem:[#allocation56_spill] sm:$0xff]  ;;  %v6691_v10 = vld [vmem:[#allocation59_spill] sm:$0xff]  ;;  %v6693_v1 = vld [vmem:[#allocation61_spill] sm:$0xff] }
 0x4f3   :  { %v3044_v44 = vmul.f32 %v6684_v35, %v6681_v16  ;;  %v3045_v50 = vmul.f32 %v6685_v5, %v6681_v16  ;;  %v3046_v39 = vmul.f32 %v6686_v46, %v6681_v16  ;;  %v3047_v32 = vmul.f32 %v6687_v26, %v6681_v16  ;;  %v6695_v22 = vld [vmem:[#allocation62_spill] sm:$0xff]  ;;  %v6696_v52 = vld [vmem:[#allocation63_spill] sm:$0xff]  ;;  %v5848_v46 = vpop.permute.xlu0 %3899 }
 0x4f4   :  { %v3048_v4 = vmul.f32 %v6688_v47, %v6681_v16  ;;  %v3049_v58 = vmul.f32 %v6689_v37, %v6681_v16  ;;  %v3050_v21 = vmul.f32 %v6690_v53, %v6681_v16  ;;  %v3051_v13 = vmul.f32 %v6691_v10, %v6681_v16  ;;  %v5834_v8 = vpop.f32.mrb[32].mxu1  ;;  %v6697_v37 = vld [vmem:[#allocation64_spill] sm:$0xff]  ;;  %v6698_v47 = vld [vmem:[#allocation65_spill] sm:$0xff]  ;;  %v6759_v24 = vld [vmem:[#allocation119_spill] sm:$0xff] }
 0x4f5   :  { %v3052_v48 = vmul.f32 %v6692_v36, %v6681_v16  ;;  %v3053_v30 = vmul.f32 %v6693_v1, %v6681_v16  ;;  %6694 = vst [vmem:[#allocation112_spill] sm:$0xff] %v5834_v8  ;;  %v3054_v15 = vmul.f32 %v6695_v22, %v6681_v16  ;;  %v3055_v6 = vmul.f32 %v6696_v52, %v6681_v16  ;;  %v5844_v26 = vpop.f32.mrb[33].mxu1  ;;  %v5846_v36 = vpop.permute.xlu1 %3895 }
 0x4f6   :  { %v3056_v53 = vmul.f32 %v6697_v37, %v6681_v16  ;;  %v3057_v10 = vmul.f32 %v6698_v47, %v6681_v16  ;;  %6699 = vst [vmem:[#allocation113_spill] sm:$0xff] %v5844_v26  ;;  %v3074_v1 = vadd.f32 %v3042_v29, %v2849_v51  ;;  %v3075_v5 = vadd.f32 %v3043_v43, %v2850_v41  ;;  %v6702_v51 = vld [vmem:[#allocation67_spill] sm:$0xff]  ;;  %v6711_v29 = vld [vmem:[#allocation74_spill] sm:$0xff] }
 0x4f7   :  { %v3076_v35 = vadd.f32 %v3044_v44, %v2851_v23  ;;  %v3077_v7 = vadd.f32 %v3045_v50, %v2852_v20  ;;  %v3078_v22 = vadd.f32 %v3046_v39, %v2853_v38  ;;  %v3079_v14 = vadd.f32 %v3047_v32, %v2854_v54  ;;  %v6703_v23 = vld [vmem:[#allocation68_spill] sm:$0xff]  ;;  %v6704_v38 = vld [vmem:[#allocation69_spill] sm:$0xff]  ;;  %v6712_v44 = vld [vmem:[#allocation75_spill] sm:$0xff] }
 0x4f8   :  { %v3080_v49 = vadd.f32 %v3048_v4, %v2855_v62  ;;  %v3081_v52 = vadd.f32 %v3049_v58, %v2856_v3  ;;  %v3082_v63 = vadd.f32 %v3050_v21, %v2857_v25  ;;  %v3083_v34 = vadd.f32 %v3051_v13, %v2858_v40  ;;  %v6705_v62 = vld [vmem:[#allocation70_spill] sm:$0xff]  ;;  %v6707_v25 = vld [vmem:[#allocation72_spill] sm:$0xff]  ;;  %v6714_v4 = vld [vmem:[#allocation77_spill] sm:$0xff] }
 0x4f9   :  { %v3084_v37 = vadd.f32 %v3052_v48, %v2859_v55  ;;  %v3085_v28 = vadd.f32 %v3053_v30, %v2860_v61  ;;  %v3086_v19 = vadd.f32 %v3054_v15, %v2861_v45  ;;  %v3087_v16 = vadd.f32 %v3055_v6, %v2862_v56  ;;  %v6706_v45 = vld [vmem:[#allocation71_spill] sm:$0xff]  ;;  %v6708_v55 = vld [vmem:[#allocation73_spill] sm:$0xff]  ;;  %v6713_v39 = vld [vmem:[#allocation76_spill] sm:$0xff] }
 0x4fa   :  { %v3088_v47 = vadd.f32 %v3056_v53, %v2863_v57  ;;  %v3089_v59 = vadd.f32 %v3057_v10, %v2864_v11  ;;  %v3267_v27 = vmul.f32 %v6701_v60, %v6700_v33  ;;  %v3268_v41 = vmul.f32 %v6702_v51, %v6700_v33  ;;  %v5866_v57 = vpop.permute.xlu1 %3903  ;;  %v5868_v11 = vpop.permute.xlu0 %3907  ;;  %v6715_v53 = vld [vmem:[#allocation78_spill] sm:$0xff]  ;;  %v6716_v10 = vld [vmem:[#allocation79_spill] sm:$0xff]  ;;  %v6717_v48 = vld [vmem:[#allocation80_spill] sm:$0xff] }
 0x4fb   :  { %v3269_v20 = vmul.f32 %v6703_v23, %v6700_v33  ;;  %v3270_v54 = vmul.f32 %v6704_v38, %v6700_v33  ;;  %v3271_v3 = vmul.f32 %v6705_v62, %v6700_v33  ;;  %v3272_v56 = vmul.f32 %v6706_v45, %v6700_v33  ;;  %6709 = vst [vmem:[#allocation114_spill] sm:$0xff] %v5866_v57  ;;  %v6718_v15 = vld [vmem:[#allocation81_spill] sm:$0xff] }
 0x4fc   :  { %v3273_v40 = vmul.f32 %v6707_v25, %v6700_v33  ;;  %v3274_v61 = vmul.f32 %v6708_v55, %v6700_v33  ;;  %6710 = vst [vmem:[#allocation111_spill] sm:$0xff] %v5868_v11  ;;  %v3275_v43 = vmul.f32 %v6711_v29, %v6700_v33  ;;  %v3276_v50 = vmul.f32 %v6712_v44, %v6700_v33 }
 0x4fd   :  { %v3277_v32 = vmul.f32 %v6713_v39, %v6700_v33  ;;  %v3278_v58 = vmul.f32 %v6714_v4, %v6700_v33  ;;  %v3279_v21 = vmul.f32 %v6715_v53, %v6700_v33  ;;  %v3280_v13 = vmul.f32 %v6716_v10, %v6700_v33 }
 0x4fe   :  { %v3281_v30 = vmul.f32 %v6717_v48, %v6700_v33  ;;  %v3282_v6 = vmul.f32 %v6718_v15, %v6700_v33  ;;  %v3299_v29 = vadd.f32 %v3267_v27, %v3074_v1  ;;  %v3300_v44 = vadd.f32 %v3268_v41, %v3075_v5  ;;  %v5886_v48 = vpop.permute.xlu1 %3911  ;;  %v5888_v31 = vpop.permute.xlu0 %3915  ;;  %v6721_v27 = vld [vmem:[#allocation121_spill] sm:$0xff]  ;;  %v6722_v33 = vld [vmem:[#allocation82_spill] sm:$0xff] }
 0x4ff   :  { %v3301_v55 = vadd.f32 %v3269_v20, %v3076_v35  ;;  %v3302_v25 = vadd.f32 %v3270_v54, %v3077_v7  ;;  %v3303_v39 = vadd.f32 %v3271_v3, %v3078_v22  ;;  %v3304_v45 = vadd.f32 %v3272_v56, %v3079_v14  ;;  %6719 = vst [vmem:[#allocation120_spill] sm:$0xff] %v5886_v48  ;;  %v6723_v7 = vld [vmem:[#allocation83_spill] sm:$0xff]  ;;  %v6729_v22 = vld [vmem:[#allocation89_spill] sm:$0xff]  ;;  %v6732_v3 = vld [vmem:[#allocation92_spill] sm:$0xff] }
 0x500   :  { %v3305_v62 = vadd.f32 %v3273_v40, %v3080_v49  ;;  %v3306_v4 = vadd.f32 %v3274_v61, %v3081_v52  ;;  %v3307_v38 = vadd.f32 %v3275_v43, %v3082_v63  ;;  %v3308_v23 = vadd.f32 %v3276_v50, %v3083_v34  ;;  %6720 = vst [vmem:[#allocation124_spill] sm:$0xff] %v5888_v31  ;;  %v6724_v49 = vld [vmem:[#allocation84_spill] sm:$0xff]  ;;  %v6725_v34 = vld [vmem:[#allocation85_spill] sm:$0xff]  ;;  %v6731_v20 = vld [vmem:[#allocation91_spill] sm:$0xff] }
 0x501   :  { %v3309_v53 = vadd.f32 %v3277_v32, %v3084_v37  ;;  %v3310_v51 = vadd.f32 %v3278_v58, %v3085_v28  ;;  %v3311_v60 = vadd.f32 %v3279_v21, %v3086_v19  ;;  %v3312_v10 = vadd.f32 %v3280_v13, %v3087_v16  ;;  %v6726_v19 = vld [vmem:[#allocation86_spill] sm:$0xff]  ;;  %v6728_v37 = vld [vmem:[#allocation88_spill] sm:$0xff]  ;;  %v6733_v40 = vld [vmem:[#allocation93_spill] sm:$0xff] }
 0x502   :  { %v3313_v42 = vadd.f32 %v3281_v30, %v3088_v47  ;;  %v3314_v9 = vadd.f32 %v3282_v6, %v3089_v59  ;;  %v3492_v35 = vmul.f32 %v6722_v33, %v6721_v27  ;;  %v3493_v14 = vmul.f32 %v6723_v7, %v6721_v27  ;;  %v6727_v59 = vld [vmem:[#allocation87_spill] sm:$0xff]  ;;  %v6730_v16 = vld [vmem:[#allocation90_spill] sm:$0xff]  ;;  %v6736_v21 = vld [vmem:[#allocation96_spill] sm:$0xff] }
 0x503   :  { %v3494_v63 = vmul.f32 %v6724_v49, %v6721_v27  ;;  %v3495_v28 = vmul.f32 %v6725_v34, %v6721_v27  ;;  %v3496_v5 = vmul.f32 %v6726_v19, %v6721_v27  ;;  %v3497_v47 = vmul.f32 %v6727_v59, %v6721_v27  ;;  %v6734_v43 = vld [vmem:[#allocation94_spill] sm:$0xff]  ;;  %v6735_v32 = vld [vmem:[#allocation95_spill] sm:$0xff]  ;;  %v6737_v30 = vld [vmem:[#allocation97_spill] sm:$0xff]  ;;  %v5922_v34 = vpop.permute.xlu1 %3919 }
 0x504   :  { %v3498_v1 = vmul.f32 %v6728_v37, %v6721_v27  ;;  %v3499_v52 = vmul.f32 %v6729_v22, %v6721_v27  ;;  %v3500_v41 = vmul.f32 %v6730_v16, %v6721_v27  ;;  %v3501_v54 = vmul.f32 %v6731_v20, %v6721_v27  ;;  %6738 = vst [vmem:[#allocation121_spill] sm:$0xff] %v5922_v34 }
 0x505   :  { %v3502_v56 = vmul.f32 %v6732_v3, %v6721_v27  ;;  %v3503_v61 = vmul.f32 %v6733_v40, %v6721_v27  ;;  %v3504_v50 = vmul.f32 %v6734_v43, %v6721_v27  ;;  %v3505_v58 = vmul.f32 %v6735_v32, %v6721_v27  ;;  %v5924_v43 = vpop.permute.xlu0 %3923 }
 0x506   :  { %v3506_v13 = vmul.f32 %v6736_v21, %v6721_v27  ;;  %v3507_v6 = vmul.f32 %v6737_v30, %v6721_v27  ;;  %v3524_v16 = vadd.f32 %v3492_v35, %v3299_v29  ;;  %v3525_v20 = vadd.f32 %v3493_v14, %v3300_v44  ;;  %6739 = vst [vmem:[#allocation125_spill] sm:$0xff] %v5924_v43  ;;  %v6740_v29 = vld [vmem:[#allocation98_spill] sm:$0xff] }
 0x507   :  { %v3526_v22 = vadd.f32 %v3494_v63, %v3301_v55  ;;  %v3527_v37 = vadd.f32 %v3495_v28, %v3302_v25  ;;  %v3528_v3 = vadd.f32 %v3496_v5, %v3303_v39  ;;  %v3529_v59 = vadd.f32 %v3497_v47, %v3304_v45  ;;  %v6741_v44 = vld [vmem:[#allocation118_spill] sm:$0xff]  ;;  %v6742_v25 = vld [vmem:[#allocation99_spill] sm:$0xff]  ;;  %v6751_v47 = vld [vmem:[#allocation108_spill] sm:$0xff] }
 0x508   :  { %v3530_v19 = vadd.f32 %v3498_v1, %v3305_v62  ;;  %v3531_v40 = vadd.f32 %v3499_v52, %v3306_v4  ;;  %v3532_v49 = vadd.f32 %v3500_v41, %v3307_v38  ;;  %v3533_v32 = vadd.f32 %v3501_v54, %v3308_v23  ;;  %v6743_v62 = vld [vmem:[#allocation100_spill] sm:$0xff]  ;;  %v6744_v4 = vld [vmem:[#allocation101_spill] sm:$0xff]  ;;  %v6745_v38 = vld [vmem:[#allocation102_spill] sm:$0xff] }
 0x509   :  { %v3534_v7 = vadd.f32 %v3502_v56, %v3309_v53  ;;  %v3535_v33 = vadd.f32 %v3503_v61, %v3310_v51  ;;  %v3536_v21 = vadd.f32 %v3504_v50, %v3311_v60  ;;  %v3537_v15 = vadd.f32 %v3505_v58, %v3312_v10  ;;  %v6746_v51 = vld [vmem:[#allocation103_spill] sm:$0xff]  ;;  %v6748_v53 = vld [vmem:[#allocation105_spill] sm:$0xff]  ;;  %v6749_v14 = vld [vmem:[#allocation106_spill] sm:$0xff] }
 0x50a   :  { %v3538_v26 = vadd.f32 %v3506_v13, %v3313_v42  ;;  %v3539_v27 = vadd.f32 %v3507_v6, %v3314_v9  ;;  %v3717_v55 = vmul.f32 %v6741_v44, %v6740_v29  ;;  %v3718_v45 = vmul.f32 %v6741_v44, %v6742_v25  ;;  %v6747_v42 = vld [vmem:[#allocation104_spill] sm:$0xff]  ;;  %v6750_v28 = vld [vmem:[#allocation107_spill] sm:$0xff]  ;;  %v6752_v52 = vld [vmem:[#allocation109_spill] sm:$0xff] }
 0x50b   :  { %v3719_v39 = vmul.f32 %v6741_v44, %v6743_v62  ;;  %v3720_v35 = vmul.f32 %v6741_v44, %v6744_v4  ;;  %v3721_v23 = vmul.f32 %v6741_v44, %v6745_v38  ;;  %v3722_v60 = vmul.f32 %v6741_v44, %v6746_v51  ;;  %v6753_v54 = vld [vmem:[#allocation110_spill] sm:$0xff]  ;;  %v6754_v61 = vld [vmem:[#allocation115_spill] sm:$0xff]  ;;  %v6755_v58 = vld [vmem:[#allocation116_spill] sm:$0xff] }
 0x50c   :  { %v3723_v9 = vmul.f32 %v6741_v44, %v6747_v42  ;;  %v3724_v10 = vmul.f32 %v6741_v44, %v6748_v53  ;;  %v3725_v63 = vmul.f32 %v6741_v44, %v6749_v14  ;;  %v3726_v5 = vmul.f32 %v6741_v44, %v6750_v28  ;;  %v6756_v6 = vld [vmem:[#allocation117_spill] sm:$0xff]  ;;  %v5958_v28 = vpop.permute.xlu1 %3927  ;;  %v5960_v53 = vpop.permute.xlu0 %3931 }
 0x50d   :  { %v3727_v1 = vmul.f32 %v6741_v44, %v6751_v47  ;;  %v3728_v41 = vmul.f32 %v6741_v44, %v6752_v52  ;;  %v3729_v56 = vmul.f32 %v6741_v44, %v6753_v54  ;;  %v3730_v50 = vmul.f32 %v6741_v44, %v6754_v61  ;;  %6757 = vst [vmem:[#allocation118_spill] sm:$0xff] %v5958_v28 }
 0x50e   :  { %v3731_v13 = vmul.f32 %v6741_v44, %v6755_v58  ;;  %v3732_v14 = vmul.f32 %v6741_v44, %v6756_v6  ;;  %6758 = vst [vmem:[#allocation126_spill] sm:$0xff] %v5960_v53  ;;  %v3749_v47 = vadd.f32 %v3717_v55, %v3524_v16  ;;  %v3750_v42 = vadd.f32 %v3718_v45, %v3525_v20 }
 0x50f   :  { %v3751_v52 = vadd.f32 %v3719_v39, %v3526_v22  ;;  %v3752_v51 = vadd.f32 %v3720_v35, %v3527_v37  ;;  %v3753_v38 = vadd.f32 %v3721_v23, %v3528_v3  ;;  %v3754_v54 = vadd.f32 %v3722_v60, %v3529_v59 }
 0x510   :  { %v3755_v4 = vadd.f32 %v3723_v9, %v3530_v19  ;;  %v3756_v62 = vadd.f32 %v3724_v10, %v3531_v40  ;;  %v3757_v61 = vadd.f32 %v3725_v63, %v3532_v49  ;;  %v3758_v25 = vadd.f32 %v3726_v5, %v3533_v32  ;;  %v5978_v49 = vpop.permute.xlu1 %3935  ;;  %v5980_v59 = vpop.permute.xlu0 %3939 }
 0x511   :  { %v3759_v29 = vadd.f32 %v3727_v1, %v3534_v7  ;;  %v3760_v58 = vadd.f32 %v3728_v41, %v3535_v33  ;;  %v3761_v30 = vadd.f32 %v3729_v56, %v3536_v21  ;;  %v3762_v8 = vadd.f32 %v3730_v50, %v3537_v15  ;;  %6760 = vst [vmem:[#allocation119_spill] sm:$0xff] %v5978_v49  ;;  %v6767_v56 = vld [vmem:[#allocation18_spill] sm:$0xff]  ;;  %v6768_v50 = vld [vmem:[#allocation4_spill] sm:$0xff] }
 0x512   :  { %v3763_v44 = vadd.f32 %v3731_v13, %v3538_v26  ;;  %v3764_v6 = vadd.f32 %v3732_v14, %v3539_v27  ;;  %v3942_v0 = vmul.f32 %v5769_v18, %v6759_v24  ;;  %v3943_v16 = vmul.f32 %v5771_v2, %v6759_v24  ;;  %6761 = vst [vmem:[#allocation127_spill] sm:$0xff] %v5980_v59  ;;  %v6769_v13 = vld [vmem:[#allocation19_spill] sm:$0xff] }
 0x513   :  { %v3944_v37 = vmul.f32 %v5806_v12, %v6759_v24  ;;  %v3945_v19 = vmul.f32 %v5808_v17, %v6759_v24  ;;  %v3946_v7 = vmul.f32 %v5846_v36, %v6759_v24  ;;  %v3947_v15 = vmul.f32 %v5848_v46, %v6759_v24 }
 0x514   :  { %v3948_v26 = vmul.f32 %v5866_v57, %v6759_v24  ;;  %v3949_v33 = vmul.f32 %v5868_v11, %v6759_v24  ;;  %v3950_v22 = vmul.f32 %v5886_v48, %v6759_v24  ;;  %v3951_v20 = vmul.f32 %v5888_v31, %v6759_v24  ;;  %v6798_v57 = vld [vmem:[#allocation34_spill] sm:$0xff] }
 0x515   :  { %v3952_v3 = vmul.f32 %v5922_v34, %v6759_v24  ;;  %v3953_v40 = vmul.f32 %v5924_v43, %v6759_v24  ;;  %v3954_v32 = vmul.f32 %v5958_v28, %v6759_v24  ;;  %v3955_v21 = vmul.f32 %v5960_v53, %v6759_v24 }
 0x516   :  { %v3956_v27 = vmul.f32 %v5978_v49, %v6759_v24  ;;  %v3957_v55 = vmul.f32 %v5980_v59, %v6759_v24  ;;  %v3974_v45 = vadd.f32 %v3942_v0, %v3749_v47  ;;  %v3975_v39 = vadd.f32 %v3943_v16, %v3750_v42  ;;  %v6765_v42 = vld [vmem:[#allocation17_spill] sm:$0xff] }
 0x517   :  { %v3976_v35 = vadd.f32 %v3944_v37, %v3751_v52  ;;  %v3977_v23 = vadd.f32 %v3945_v19, %v3752_v51  ;;  %v3978_v60 = vadd.f32 %v3946_v7, %v3753_v38  ;;  %v3979_v9 = vadd.f32 %v3947_v15, %v3754_v54  ;;  %v6764_v38 = vld [vmem:[#allocation2_spill] sm:$0xff]  ;;  %v6766_v52 = vld [vmem:[#allocation3_spill] sm:$0xff]  ;;  %v6771_v37 = vld [vmem:[#allocation20_spill] sm:$0xff] }
 0x518   :  { %v3980_v10 = vadd.f32 %v3948_v26, %v3755_v4  ;;  %v3981_v14 = vadd.f32 %v3949_v33, %v3756_v62  ;;  %v3982_v63 = vadd.f32 %v3950_v22, %v3757_v61  ;;  %v3983_v5 = vadd.f32 %v3951_v20, %v3758_v25  ;;  %4007 = vst.msk [vmem:[%s6393_s13] sm:$0xf] %vm4006_vm6, %v3974_v45  ;;  %v6763_v62 = vld [vmem:[#allocation123_spill] sm:$0xff]  ;;  %v6772_v7 = vld [vmem:[#allocation6_spill] sm:$0xff]  ;;  %v6773_v26 = vld [vmem:[#allocation21_spill] sm:$0xff] }
 0x519   :  { %v3984_v1 = vadd.f32 %v3952_v3, %v3759_v29  ;;  %v3985_v41 = vadd.f32 %v3953_v40, %v3760_v58  ;;  %4008 = vst.msk [vmem:[%s6393_s13 + $0x4] sm:$0xf] %vm4006_vm6, %v3975_v39  ;;  %4009 = vst.msk [vmem:[%s6393_s13 + $0x8] sm:$0xf] %vm4006_vm6, %v3976_v35  ;;  %v3986_v0 = vadd.f32 %v3954_v32, %v3761_v30  ;;  %v6774_v22 = vld [vmem:[#allocation7_spill] sm:$0xff]  ;;  %v6775_v3 = vld [vmem:[#allocation22_spill] sm:$0xff] }
 0x51a   :  { %4010 = vst.msk [vmem:[%s6393_s13 + $0xc] sm:$0xf] %vm4006_vm6, %v3977_v23  ;;  %v3987_v24 = vadd.f32 %v3955_v21, %v3762_v8  ;;  %v3988_v29 = vadd.f32 %v3956_v27, %v3763_v44  ;;  %v3989_v25 = vadd.f32 %v3957_v55, %v3764_v6  ;;  %4011 = vst.msk [vmem:[%s6393_s13 + $0x10] sm:$0xf] %vm4006_vm6, %v3978_v60  ;;  %v6762_v8 = vld [vmem:[#allocation122_spill] sm:$0xff]  ;;  %v6770_v44 = vld [vmem:[#allocation5_spill] sm:$0xff] }
 0x51b   :  { %4012 = vst.msk [vmem:[%s6393_s13 + $0x14] sm:$0xf] %vm4006_vm6, %v3979_v9  ;;  %4013 = vst.msk [vmem:[%s6393_s13 + $0x18] sm:$0xf] %vm4006_vm6, %v3980_v10  ;;  %v6048_v30 = vcombine.high %v6762_v8, %v6762_v8  ;;  %v2195_v4 = vcombine.high %v6763_v62, %v6763_v62  ;;  %v2383_v51 = vmul.f32 %v6764_v38, %v6763_v62  ;;  %v6776_v32 = vld [vmem:[#allocation8_spill] sm:$0xff]  ;;  %v6777_v27 = vld [vmem:[#allocation23_spill] sm:$0xff] }
 0x51c   :  { %4014 = vst.msk [vmem:[%s6393_s13 + $0x1c] sm:$0xf] %vm4006_vm6, %v3981_v14  ;;  %4015 = vst.msk [vmem:[%s6393_s13 + $0x20] sm:$0xf] %vm4006_vm6, %v3982_v63  ;;  %v2384_v47 = vmul.f32 %v6765_v42, %v6763_v62  ;;  %v2385_v54 = vmul.f32 %v6766_v52, %v6763_v62  ;;  %v2386_v61 = vmul.f32 %v6767_v56, %v6763_v62  ;;  %v6778_v45 = vld [vmem:[#allocation9_spill] sm:$0xff]  ;;  %v6779_v35 = vld [vmem:[#allocation24_spill] sm:$0xff] }
 0x51d   :  { %4016 = vst.msk [vmem:[%s6393_s13 + $0x24] sm:$0xf] %vm4006_vm6, %v3983_v5  ;;  %4017 = vst.msk [vmem:[%s6393_s13 + $0x28] sm:$0xf] %vm4006_vm6, %v3984_v1  ;;  %v2387_v58 = vmul.f32 %v6768_v50, %v6763_v62  ;;  %v2388_v6 = vmul.f32 %v6769_v13, %v6763_v62  ;;  %v2389_v16 = vmul.f32 %v6770_v44, %v6763_v62  ;;  %v6780_v60 = vld [vmem:[#allocation112_spill] sm:$0xff]  ;;  %v6781_v10 = vld [vmem:[#allocation113_spill] sm:$0xff] }
 0x51e   :  { %4018 = vst.msk [vmem:[%s6393_s13 + $0x2c] sm:$0xf] %vm4006_vm6, %v3985_v41  ;;  %4019 = vst.msk [vmem:[%s6393_s13 + $0x30] sm:$0xf] %vm4006_vm6, %v3986_v0  ;;  %v2390_v19 = vmul.f32 %v6771_v37, %v6763_v62  ;;  %v2391_v15 = vmul.f32 %v6772_v7, %v6763_v62  ;;  %v2392_v33 = vmul.f32 %v6773_v26, %v6763_v62  ;;  %v6782_v63 = vld [vmem:[#allocation10_spill] sm:$0xff]  ;;  %v6783_v1 = vld [vmem:[#allocation25_spill] sm:$0xff] }
 0x51f   :  { %4020 = vst.msk [vmem:[%s6393_s13 + $0x34] sm:$0xf] %vm4006_vm6, %v3987_v24  ;;  %4021 = vst.msk [vmem:[%s6393_s13 + $0x38] sm:$0xf] %vm4006_vm6, %v3988_v29  ;;  %v2393_v20 = vmul.f32 %v6774_v22, %v6763_v62  ;;  %v2394_v40 = vmul.f32 %v6775_v3, %v6763_v62  ;;  %v2395_v21 = vmul.f32 %v6776_v32, %v6763_v62  ;;  %v6784_v0 = vld [vmem:[#allocation11_spill] sm:$0xff]  ;;  %v6785_v29 = vld [vmem:[#allocation26_spill] sm:$0xff] }
 0x520   :  { %4022 = vst.msk [vmem:[%s6393_s13 + $0x3c] sm:$0xf] %vm4006_vm6, %v3989_v25  ;;  %v2396_v55 = vmul.f32 %v6777_v27, %v6763_v62  ;;  %v2397_v39 = vmul.f32 %v6778_v45, %v6763_v62  ;;  %v2398_v23 = vmul.f32 %v6779_v35, %v6763_v62  ;;  %v6102_v9 = vcombine.high %v6780_v60, %v6780_v60  ;;  %v6786_v38 = vld [vmem:[#allocation12_spill] sm:$0xff]  ;;  %v6787_v52 = vld [vmem:[#allocation27_spill] sm:$0xff]  ;;  %v6788_v56 = vld [vmem:[#allocation13_spill] sm:$0xff] }
 0x521   :  { %v6106_v14 = vcombine.high %v6781_v10, %v6781_v10  ;;  %v2608_v5 = vmul.f32 %v6782_v63, %v2195_v4  ;;  %v2609_v41 = vmul.f32 %v6783_v1, %v2195_v4  ;;  %v2610_v24 = vmul.f32 %v6784_v0, %v2195_v4  ;;  %v6789_v13 = vld [vmem:[#allocation28_spill] sm:$0xff]  ;;  %v6790_v37 = vld [vmem:[#allocation14_spill] sm:$0xff]  ;;  %v6791_v26 = vld [vmem:[#allocation29_spill] sm:$0xff] }
 0x522   :  { %v2611_v25 = vmul.f32 %v6785_v29, %v2195_v4  ;;  %v2612_v42 = vmul.f32 %v6786_v38, %v2195_v4  ;;  %v2613_v62 = vmul.f32 %v6787_v52, %v2195_v4  ;;  %v2614_v50 = vmul.f32 %v6788_v56, %v2195_v4  ;;  %v6792_v3 = vld [vmem:[#allocation15_spill] sm:$0xff]  ;;  %v6793_v27 = vld [vmem:[#allocation30_spill] sm:$0xff]  ;;  %v6794_v35 = vld [vmem:[#allocation16_spill] sm:$0xff] }
 0x523   :  { %v2615_v44 = vmul.f32 %v6789_v13, %v2195_v4  ;;  %v2616_v7 = vmul.f32 %v6790_v37, %v2195_v4  ;;  %v2617_v22 = vmul.f32 %v6791_v26, %v2195_v4  ;;  %v2618_v32 = vmul.f32 %v6792_v3, %v2195_v4  ;;  %v6795_v1 = vld [vmem:[#allocation31_spill] sm:$0xff]  ;;  %v6796_v29 = vld [vmem:[#allocation32_spill] sm:$0xff]  ;;  %v6797_v59 = vld [vmem:[#allocation33_spill] sm:$0xff] }
 0x524   :  { %v2619_v45 = vmul.f32 %v6793_v27, %v2195_v4  ;;  %v2620_v63 = vmul.f32 %v6794_v35, %v2195_v4  ;;  %v2621_v0 = vmul.f32 %v6795_v1, %v2195_v4  ;;  %v2622_v38 = vmul.f32 %v6796_v29, %v2195_v4 }
 0x525   :  { %v2623_v52 = vmul.f32 %v6797_v59, %v2195_v4  ;;  %v2640_v49 = vadd.f32 %v2608_v5, %v2383_v51  ;;  %v2641_v56 = vadd.f32 %v2609_v41, %v2384_v47  ;;  %v2642_v53 = vadd.f32 %v2610_v24, %v2385_v54  ;;  %v6799_v59 = vld [vmem:[#allocation35_spill] sm:$0xff]  ;;  %v6800_v51 = vld [vmem:[#allocation36_spill] sm:$0xff]  ;;  %v6801_v54 = vld [vmem:[#allocation37_spill] sm:$0xff] }
 0x526   :  { %v2643_v13 = vadd.f32 %v2611_v25, %v2386_v61  ;;  %v2644_v28 = vadd.f32 %v2612_v42, %v2387_v58  ;;  %v2645_v37 = vadd.f32 %v2613_v62, %v2388_v6  ;;  %v2646_v43 = vadd.f32 %v2614_v50, %v2389_v16  ;;  %v6802_v58 = vld [vmem:[#allocation38_spill] sm:$0xff]  ;;  %v6803_v16 = vld [vmem:[#allocation39_spill] sm:$0xff]  ;;  %v6809_v41 = vld [vmem:[#allocation45_spill] sm:$0xff] }
 0x527   :  { %v2647_v26 = vadd.f32 %v2615_v44, %v2390_v19  ;;  %v2648_v34 = vadd.f32 %v2616_v7, %v2391_v15  ;;  %v2649_v3 = vadd.f32 %v2617_v22, %v2392_v33  ;;  %v2650_v31 = vadd.f32 %v2618_v32, %v2393_v20  ;;  %v6804_v15 = vld [vmem:[#allocation40_spill] sm:$0xff]  ;;  %v6805_v20 = vld [vmem:[#allocation41_spill] sm:$0xff]  ;;  %v6810_v25 = vld [vmem:[#allocation46_spill] sm:$0xff] }
 0x528   :  { %v2651_v27 = vadd.f32 %v2619_v45, %v2394_v40  ;;  %v2652_v48 = vadd.f32 %v2620_v63, %v2395_v21  ;;  %v2653_v35 = vadd.f32 %v2621_v0, %v2396_v55  ;;  %v2654_v11 = vadd.f32 %v2622_v38, %v2397_v39  ;;  %v6806_v40 = vld [vmem:[#allocation42_spill] sm:$0xff]  ;;  %v6807_v55 = vld [vmem:[#allocation43_spill] sm:$0xff]  ;;  %v6812_v44 = vld [vmem:[#allocation48_spill] sm:$0xff] }
 0x529   :  { %v2655_v1 = vadd.f32 %v2623_v52, %v2398_v23  ;;  %v2833_v29 = vmul.f32 %v6762_v8, %v6798_v57  ;;  %v2834_v4 = vmul.f32 %v6762_v8, %v6799_v59  ;;  %v2835_v47 = vmul.f32 %v6762_v8, %v6800_v51  ;;  %v6808_v23 = vld [vmem:[#allocation44_spill] sm:$0xff]  ;;  %v6811_v62 = vld [vmem:[#allocation47_spill] sm:$0xff]  ;;  %v6813_v22 = vld [vmem:[#allocation49_spill] sm:$0xff] }
 0x52a   :  { %v2836_v61 = vmul.f32 %v6762_v8, %v6801_v54  ;;  %v2837_v6 = vmul.f32 %v6762_v8, %v6802_v58  ;;  %v2838_v19 = vmul.f32 %v6762_v8, %v6803_v16  ;;  %v2839_v33 = vmul.f32 %v6762_v8, %v6804_v15 }
 0x52b   :  { %v2840_v57 = vmul.f32 %v6762_v8, %v6805_v20  ;;  %v2841_v21 = vmul.f32 %v6762_v8, %v6806_v40  ;;  %v2842_v39 = vmul.f32 %v6762_v8, %v6807_v55  ;;  %v2843_v5 = vmul.f32 %v6762_v8, %v6808_v23 }
 0x52c   :  { %v2844_v24 = vmul.f32 %v6762_v8, %v6809_v41  ;;  %v2845_v42 = vmul.f32 %v6762_v8, %v6810_v25  ;;  %v2846_v50 = vmul.f32 %v6762_v8, %v6811_v62  ;;  %v2847_v7 = vmul.f32 %v6762_v8, %v6812_v44  ;;  %v6814_v25 = vld [vmem:[#allocation50_spill] sm:$0xff] }
 0x52d   :  { %v2848_v32 = vmul.f32 %v6762_v8, %v6813_v22  ;;  %v2865_v45 = vadd.f32 %v2833_v29, %v2640_v49  ;;  %v2866_v63 = vadd.f32 %v2834_v4, %v2641_v56  ;;  %v2867_v0 = vadd.f32 %v2835_v47, %v2642_v53  ;;  %v6815_v49 = vld [vmem:[#allocation51_spill] sm:$0xff]  ;;  %v6816_v53 = vld [vmem:[#allocation52_spill] sm:$0xff] }
 0x52e   :  { %v2868_v38 = vadd.f32 %v2836_v61, %v2643_v13  ;;  %v2869_v52 = vadd.f32 %v2837_v6, %v2644_v28  ;;  %v2870_v59 = vadd.f32 %v2838_v19, %v2645_v37  ;;  %v2871_v51 = vadd.f32 %v2839_v33, %v2646_v43  ;;  %v6817_v43 = vld [vmem:[#allocation53_spill] sm:$0xff]  ;;  %v6824_v4 = vld [vmem:[#allocation60_spill] sm:$0xff]  ;;  %v6826_v19 = vld [vmem:[#allocation62_spill] sm:$0xff] }
 0x52f   :  { %v2872_v54 = vadd.f32 %v2840_v57, %v2647_v26  ;;  %v2873_v58 = vadd.f32 %v2841_v21, %v2648_v34  ;;  %v2874_v16 = vadd.f32 %v2842_v39, %v2649_v3  ;;  %v2875_v15 = vadd.f32 %v2843_v5, %v2650_v31  ;;  %v6818_v34 = vld [vmem:[#allocation54_spill] sm:$0xff]  ;;  %v6821_v26 = vld [vmem:[#allocation57_spill] sm:$0xff]  ;;  %v6827_v57 = vld [vmem:[#allocation63_spill] sm:$0xff] }
 0x530   :  { %v2876_v20 = vadd.f32 %v2844_v24, %v2651_v27  ;;  %v2877_v40 = vadd.f32 %v2845_v42, %v2652_v48  ;;  %v2878_v55 = vadd.f32 %v2846_v50, %v2653_v35  ;;  %v2879_v23 = vadd.f32 %v2847_v7, %v2654_v11  ;;  %v6819_v48 = vld [vmem:[#allocation55_spill] sm:$0xff]  ;;  %v6820_v11 = vld [vmem:[#allocation56_spill] sm:$0xff]  ;;  %v6822_v27 = vld [vmem:[#allocation58_spill] sm:$0xff] }
 0x531   :  { %v2880_v41 = vadd.f32 %v2848_v32, %v2655_v1  ;;  %v3058_v62 = vmul.f32 %v6814_v25, %v6048_v30  ;;  %v3059_v8 = vmul.f32 %v6815_v49, %v6048_v30  ;;  %v3060_v28 = vmul.f32 %v6816_v53, %v6048_v30  ;;  %v6823_v1 = vld [vmem:[#allocation59_spill] sm:$0xff]  ;;  %v6825_v61 = vld [vmem:[#allocation61_spill] sm:$0xff]  ;;  %v6828_v39 = vld [vmem:[#allocation64_spill] sm:$0xff] }
 0x532   :  { %v3061_v56 = vmul.f32 %v6817_v43, %v6048_v30  ;;  %v3062_v31 = vmul.f32 %v6818_v34, %v6048_v30  ;;  %v3063_v13 = vmul.f32 %v6819_v48, %v6048_v30  ;;  %v3064_v37 = vmul.f32 %v6820_v11, %v6048_v30  ;;  %v6829_v24 = vld [vmem:[#allocation65_spill] sm:$0xff] }
 0x533   :  { %v3065_v3 = vmul.f32 %v6821_v26, %v6048_v30  ;;  %v3066_v35 = vmul.f32 %v6822_v27, %v6048_v30  ;;  %v3067_v29 = vmul.f32 %v6823_v1, %v6048_v30  ;;  %v3068_v47 = vmul.f32 %v6824_v4, %v6048_v30 }
 0x534   :  { %v3069_v6 = vmul.f32 %v6825_v61, %v6048_v30  ;;  %v3070_v33 = vmul.f32 %v6826_v19, %v6048_v30  ;;  %v3071_v21 = vmul.f32 %v6827_v57, %v6048_v30  ;;  %v3072_v5 = vmul.f32 %v6828_v39, %v6048_v30  ;;  %v6830_v61 = vld [vmem:[#allocation66_spill] sm:$0xff] }
 0x535   :  { %v3073_v42 = vmul.f32 %v6829_v24, %v6048_v30  ;;  %v3090_v50 = vadd.f32 %v3058_v62, %v2865_v45  ;;  %v3091_v44 = vadd.f32 %v3059_v8, %v2866_v63  ;;  %v3092_v7 = vadd.f32 %v3060_v28, %v2867_v0  ;;  %v6831_v30 = vld [vmem:[#allocation67_spill] sm:$0xff]  ;;  %v6832_v63 = vld [vmem:[#allocation68_spill] sm:$0xff] }
 0x536   :  { %v3093_v22 = vadd.f32 %v3061_v56, %v2868_v38  ;;  %v3094_v32 = vadd.f32 %v3062_v31, %v2869_v52  ;;  %v3095_v25 = vadd.f32 %v3063_v13, %v2870_v59  ;;  %v3096_v49 = vadd.f32 %v3064_v37, %v2871_v51  ;;  %v6833_v38 = vld [vmem:[#allocation69_spill] sm:$0xff]  ;;  %v6834_v59 = vld [vmem:[#allocation70_spill] sm:$0xff]  ;;  %v6840_v8 = vld [vmem:[#allocation76_spill] sm:$0xff] }
 0x537   :  { %v3097_v53 = vadd.f32 %v3065_v3, %v2872_v54  ;;  %v3098_v43 = vadd.f32 %v3066_v35, %v2873_v58  ;;  %v3099_v34 = vadd.f32 %v3067_v29, %v2874_v16  ;;  %v3100_v48 = vadd.f32 %v3068_v47, %v2875_v15  ;;  %v6835_v54 = vld [vmem:[#allocation71_spill] sm:$0xff]  ;;  %v6836_v16 = vld [vmem:[#allocation72_spill] sm:$0xff]  ;;  %v6841_v56 = vld [vmem:[#allocation77_spill] sm:$0xff] }
 0x538   :  { %v3101_v11 = vadd.f32 %v3069_v6, %v2876_v20  ;;  %v3102_v26 = vadd.f32 %v3070_v33, %v2877_v40  ;;  %v3103_v27 = vadd.f32 %v3071_v21, %v2878_v55  ;;  %v3104_v1 = vadd.f32 %v3072_v5, %v2879_v23  ;;  %v6837_v20 = vld [vmem:[#allocation73_spill] sm:$0xff]  ;;  %v6838_v55 = vld [vmem:[#allocation74_spill] sm:$0xff]  ;;  %v6843_v3 = vld [vmem:[#allocation79_spill] sm:$0xff] }
 0x539   :  { %v3105_v4 = vadd.f32 %v3073_v42, %v2880_v41  ;;  %v3283_v19 = vmul.f32 %v6830_v61, %v6781_v10  ;;  %v3284_v45 = vmul.f32 %v6831_v30, %v6781_v10  ;;  %v3285_v0 = vmul.f32 %v6832_v63, %v6781_v10  ;;  %v6839_v41 = vld [vmem:[#allocation75_spill] sm:$0xff]  ;;  %v6842_v13 = vld [vmem:[#allocation78_spill] sm:$0xff]  ;;  %v6844_v29 = vld [vmem:[#allocation80_spill] sm:$0xff] }
 0x53a   :  { %v3286_v52 = vmul.f32 %v6833_v38, %v6781_v10  ;;  %v3287_v51 = vmul.f32 %v6834_v59, %v6781_v10  ;;  %v3288_v58 = vmul.f32 %v6835_v54, %v6781_v10  ;;  %v3289_v15 = vmul.f32 %v6836_v16, %v6781_v10  ;;  %v6845_v6 = vld [vmem:[#allocation81_spill] sm:$0xff] }
 0x53b   :  { %v3290_v40 = vmul.f32 %v6837_v20, %v6781_v10  ;;  %v3291_v23 = vmul.f32 %v6838_v55, %v6781_v10  ;;  %v3292_v62 = vmul.f32 %v6839_v41, %v6781_v10  ;;  %v3293_v28 = vmul.f32 %v6840_v8, %v6781_v10  ;;  %v6846_v8 = vld [vmem:[#allocation82_spill] sm:$0xff] }
 0x53c   :  { %v3294_v31 = vmul.f32 %v6841_v56, %v6781_v10  ;;  %v3295_v37 = vmul.f32 %v6842_v13, %v6781_v10  ;;  %v3296_v35 = vmul.f32 %v6843_v3, %v6781_v10  ;;  %v3297_v47 = vmul.f32 %v6844_v29, %v6781_v10 }
 0x53d   :  { %v3298_v33 = vmul.f32 %v6845_v6, %v6781_v10  ;;  %v3315_v57 = vadd.f32 %v3283_v19, %v3090_v50  ;;  %v3316_v21 = vadd.f32 %v3284_v45, %v3091_v44  ;;  %v3317_v39 = vadd.f32 %v3285_v0, %v3092_v7  ;;  %v6847_v10 = vld [vmem:[#allocation83_spill] sm:$0xff]  ;;  %v6848_v44 = vld [vmem:[#allocation84_spill] sm:$0xff] }
 0x53e   :  { %v3318_v5 = vadd.f32 %v3286_v52, %v3093_v22  ;;  %v3319_v24 = vadd.f32 %v3287_v51, %v3094_v32  ;;  %v3320_v42 = vadd.f32 %v3288_v58, %v3095_v25  ;;  %v3321_v61 = vadd.f32 %v3289_v15, %v3096_v49  ;;  %v6849_v22 = vld [vmem:[#allocation85_spill] sm:$0xff]  ;;  %v6850_v25 = vld [vmem:[#allocation86_spill] sm:$0xff]  ;;  %v6856_v45 = vld [vmem:[#allocation92_spill] sm:$0xff] }
 0x53f   :  { %v3322_v30 = vadd.f32 %v3290_v40, %v3097_v53  ;;  %v3323_v63 = vadd.f32 %v3291_v23, %v3098_v43  ;;  %v3324_v38 = vadd.f32 %v3292_v62, %v3099_v34  ;;  %v3325_v59 = vadd.f32 %v3293_v28, %v3100_v48  ;;  %v6851_v53 = vld [vmem:[#allocation87_spill] sm:$0xff]  ;;  %v6852_v34 = vld [vmem:[#allocation88_spill] sm:$0xff]  ;;  %v6857_v52 = vld [vmem:[#allocation93_spill] sm:$0xff] }
 0x540   :  { %v3326_v54 = vadd.f32 %v3294_v31, %v3101_v11  ;;  %v3327_v16 = vadd.f32 %v3295_v37, %v3102_v26  ;;  %v3328_v20 = vadd.f32 %v3296_v35, %v3103_v27  ;;  %v3329_v55 = vadd.f32 %v3297_v47, %v3104_v1  ;;  %v6853_v11 = vld [vmem:[#allocation89_spill] sm:$0xff]  ;;  %v6854_v27 = vld [vmem:[#allocation90_spill] sm:$0xff]  ;;  %v6859_v40 = vld [vmem:[#allocation95_spill] sm:$0xff] }
 0x541   :  { %v3330_v41 = vadd.f32 %v3298_v33, %v3105_v4  ;;  %v3508_v56 = vmul.f32 %v6846_v8, %v6106_v14  ;;  %v3509_v50 = vmul.f32 %v6847_v10, %v6106_v14  ;;  %v3510_v7 = vmul.f32 %v6848_v44, %v6106_v14  ;;  %v6855_v4 = vld [vmem:[#allocation91_spill] sm:$0xff]  ;;  %v6858_v58 = vld [vmem:[#allocation94_spill] sm:$0xff]  ;;  %v6860_v62 = vld [vmem:[#allocation96_spill] sm:$0xff] }
 0x542   :  { %v3511_v32 = vmul.f32 %v6849_v22, %v6106_v14  ;;  %v3512_v49 = vmul.f32 %v6850_v25, %v6106_v14  ;;  %v3513_v43 = vmul.f32 %v6851_v53, %v6106_v14  ;;  %v3514_v48 = vmul.f32 %v6852_v34, %v6106_v14  ;;  %v6861_v31 = vld [vmem:[#allocation97_spill] sm:$0xff] }
 0x543   :  { %v3515_v26 = vmul.f32 %v6853_v11, %v6106_v14  ;;  %v3516_v1 = vmul.f32 %v6854_v27, %v6106_v14  ;;  %v3517_v19 = vmul.f32 %v6855_v4, %v6106_v14  ;;  %v3518_v0 = vmul.f32 %v6856_v45, %v6106_v14  ;;  %v6862_v4 = vld [vmem:[#allocation98_spill] sm:$0xff] }
 0x544   :  { %v3519_v51 = vmul.f32 %v6857_v52, %v6106_v14  ;;  %v3520_v15 = vmul.f32 %v6858_v58, %v6106_v14  ;;  %v3521_v23 = vmul.f32 %v6859_v40, %v6106_v14  ;;  %v3522_v28 = vmul.f32 %v6860_v62, %v6106_v14  ;;  %v6877_v52 = vld [vmem:[#allocation117_spill] sm:$0xff] }
 0x545   :  { %v3523_v13 = vmul.f32 %v6861_v31, %v6106_v14  ;;  %v3540_v37 = vadd.f32 %v3508_v56, %v3315_v57  ;;  %v3541_v3 = vadd.f32 %v3509_v50, %v3316_v21  ;;  %v3542_v35 = vadd.f32 %v3510_v7, %v3317_v39  ;;  %v6863_v14 = vld [vmem:[#allocation99_spill] sm:$0xff]  ;;  %v6864_v21 = vld [vmem:[#allocation100_spill] sm:$0xff] }
 0x546   :  { %v3543_v29 = vadd.f32 %v3511_v32, %v3318_v5  ;;  %v3544_v47 = vadd.f32 %v3512_v49, %v3319_v24  ;;  %v3545_v6 = vadd.f32 %v3513_v43, %v3320_v42  ;;  %v3546_v33 = vadd.f32 %v3514_v48, %v3321_v61  ;;  %v6865_v5 = vld [vmem:[#allocation101_spill] sm:$0xff]  ;;  %v6866_v42 = vld [vmem:[#allocation102_spill] sm:$0xff]  ;;  %v6872_v50 = vld [vmem:[#allocation108_spill] sm:$0xff] }
 0x547   :  { %v3547_v8 = vadd.f32 %v3515_v26, %v3322_v30  ;;  %v3548_v10 = vadd.f32 %v3516_v1, %v3323_v63  ;;  %v3549_v44 = vadd.f32 %v3517_v19, %v3324_v38  ;;  %v3550_v22 = vadd.f32 %v3518_v0, %v3325_v59  ;;  %v6867_v30 = vld [vmem:[#allocation103_spill] sm:$0xff]  ;;  %v6868_v38 = vld [vmem:[#allocation104_spill] sm:$0xff]  ;;  %v6873_v32 = vld [vmem:[#allocation109_spill] sm:$0xff] }
 0x548   :  { %v3551_v25 = vadd.f32 %v3519_v51, %v3326_v54  ;;  %v3552_v53 = vadd.f32 %v3520_v15, %v3327_v16  ;;  %v3553_v34 = vadd.f32 %v3521_v23, %v3328_v20  ;;  %v3554_v11 = vadd.f32 %v3522_v28, %v3329_v55  ;;  %v6869_v54 = vld [vmem:[#allocation105_spill] sm:$0xff]  ;;  %v6870_v20 = vld [vmem:[#allocation106_spill] sm:$0xff]  ;;  %v6875_v26 = vld [vmem:[#allocation115_spill] sm:$0xff] }
 0x549   :  { %v3555_v27 = vadd.f32 %v3523_v13, %v3330_v41  ;;  %v3733_v45 = vmul.f32 %v6780_v60, %v6862_v4  ;;  %v3734_v57 = vmul.f32 %v6780_v60, %v6863_v14  ;;  %v3735_v39 = vmul.f32 %v6780_v60, %v6864_v21  ;;  %v6871_v41 = vld [vmem:[#allocation107_spill] sm:$0xff]  ;;  %v6874_v43 = vld [vmem:[#allocation110_spill] sm:$0xff]  ;;  %v6876_v19 = vld [vmem:[#allocation116_spill] sm:$0xff] }
 0x54a   :  { %v3736_v24 = vmul.f32 %v6780_v60, %v6865_v5  ;;  %v3737_v61 = vmul.f32 %v6780_v60, %v6866_v42  ;;  %v3738_v63 = vmul.f32 %v6780_v60, %v6867_v30  ;;  %v3739_v59 = vmul.f32 %v6780_v60, %v6868_v38 }
 0x54b   :  { %v3740_v16 = vmul.f32 %v6780_v60, %v6869_v54  ;;  %v3741_v55 = vmul.f32 %v6780_v60, %v6870_v20  ;;  %v3742_v56 = vmul.f32 %v6780_v60, %v6871_v41  ;;  %v3743_v7 = vmul.f32 %v6780_v60, %v6872_v50 }
 0x54c   :  { %v3744_v49 = vmul.f32 %v6780_v60, %v6873_v32  ;;  %v3745_v48 = vmul.f32 %v6780_v60, %v6874_v43  ;;  %v3746_v1 = vmul.f32 %v6780_v60, %v6875_v26  ;;  %v3747_v0 = vmul.f32 %v6780_v60, %v6876_v19 }
 0x54d   :  { %v3748_v51 = vmul.f32 %v6780_v60, %v6877_v52  ;;  %v3765_v58 = vadd.f32 %v3733_v45, %v3540_v37  ;;  %v3766_v15 = vadd.f32 %v3734_v57, %v3541_v3  ;;  %v3767_v40 = vadd.f32 %v3735_v39, %v3542_v35  ;;  %v6887_v45 = vld [vmem:[#allocation127_spill] sm:$0xff] }
 0x54e   :  { %v3768_v23 = vadd.f32 %v3736_v24, %v3543_v29  ;;  %v3769_v62 = vadd.f32 %v3737_v61, %v3544_v47  ;;  %v3770_v28 = vadd.f32 %v3738_v63, %v3545_v6  ;;  %v3771_v31 = vadd.f32 %v3739_v59, %v3546_v33  ;;  %v6878_v47 = vld [vmem:[#allocation114_spill] sm:$0xff] }
 0x54f   :  { %v3772_v13 = vadd.f32 %v3740_v16, %v3547_v8  ;;  %v3773_v4 = vadd.f32 %v3741_v55, %v3548_v10  ;;  %v3774_v14 = vadd.f32 %v3742_v56, %v3549_v44  ;;  %v3775_v21 = vadd.f32 %v3743_v7, %v3550_v22 }
 0x550   :  { %v3776_v5 = vadd.f32 %v3744_v49, %v3551_v25  ;;  %v3777_v42 = vadd.f32 %v3745_v48, %v3552_v53  ;;  %v3778_v30 = vadd.f32 %v3746_v1, %v3553_v34  ;;  %v3779_v38 = vadd.f32 %v3747_v0, %v3554_v11  ;;  %v6885_v53 = vld [vmem:[#allocation126_spill] sm:$0xff]  ;;  %v6886_v11 = vld [vmem:[#allocation119_spill] sm:$0xff] }
 0x551   :  { %v3780_v54 = vadd.f32 %v3748_v51, %v3555_v27  ;;  %v3958_v20 = vmul.f32 %v5769_v18, %v6102_v9  ;;  %v3959_v60 = vmul.f32 %v5771_v2, %v6102_v9  ;;  %v3960_v37 = vmul.f32 %v5806_v12, %v6102_v9  ;;  %v6879_v18 = vld [vmem:[#allocation111_spill] sm:$0xff]  ;;  %v6880_v2 = vld [vmem:[#allocation120_spill] sm:$0xff] }
 0x552   :  { %v3961_v3 = vmul.f32 %v5808_v17, %v6102_v9  ;;  %v3962_v35 = vmul.f32 %v5846_v36, %v6102_v9  ;;  %v3963_v29 = vmul.f32 %v5848_v46, %v6102_v9  ;;  %v3964_v6 = vmul.f32 %v6878_v47, %v6102_v9  ;;  %v6881_v12 = vld [vmem:[#allocation124_spill] sm:$0xff]  ;;  %v6882_v17 = vld [vmem:[#allocation121_spill] sm:$0xff]  ;;  %v6884_v46 = vld [vmem:[#allocation118_spill] sm:$0xff] }
 0x553   :  { %v3965_v33 = vmul.f32 %v6879_v18, %v6102_v9  ;;  %v3966_v8 = vmul.f32 %v6880_v2, %v6102_v9  ;;  %v3967_v10 = vmul.f32 %v6881_v12, %v6102_v9  ;;  %v3968_v44 = vmul.f32 %v6882_v17, %v6102_v9  ;;  %v6883_v36 = vld [vmem:[#allocation125_spill] sm:$0xff] }
 0x554   :  { %v3969_v22 = vmul.f32 %v6883_v36, %v6102_v9  ;;  %v3970_v25 = vmul.f32 %v6884_v46, %v6102_v9  ;;  %v3971_v34 = vmul.f32 %v6885_v53, %v6102_v9  ;;  %v3972_v27 = vmul.f32 %v6886_v11, %v6102_v9 }
 0x555   :  { %v3973_v57 = vmul.f32 %v6887_v45, %v6102_v9  ;;  %v3990_v39 = vadd.f32 %v3958_v20, %v3765_v58  ;;  %v3991_v24 = vadd.f32 %v3959_v60, %v3766_v15  ;;  %v3992_v61 = vadd.f32 %v3960_v37, %v3767_v40 }
 0x556   :  { %v3993_v63 = vadd.f32 %v3961_v3, %v3768_v23  ;;  %v3994_v59 = vadd.f32 %v3962_v35, %v3769_v62  ;;  %v3995_v16 = vadd.f32 %v3963_v29, %v3770_v28  ;;  %v3996_v55 = vadd.f32 %v3964_v6, %v3771_v31 }
 0x557   :  { %v3997_v41 = vadd.f32 %v3965_v33, %v3772_v13  ;;  %v3998_v56 = vadd.f32 %v3966_v8, %v3773_v4  ;;  %v3999_v50 = vadd.f32 %v3967_v10, %v3774_v14  ;;  %v4000_v7 = vadd.f32 %v3968_v44, %v3775_v21  ;;  %4023 = vst.msk [vmem:[%s6393_s13 + $0x40] sm:$0xf] %vm4006_vm6, %v3990_v39 }
 0x558   :  { %v4001_v32 = vadd.f32 %v3969_v22, %v3776_v5  ;;  %4024 = vst.msk [vmem:[%s6393_s13 + $0x44] sm:$0xf] %vm4006_vm6, %v3991_v24  ;;  %4025 = vst.msk [vmem:[%s6393_s13 + $0x48] sm:$0xf] %vm4006_vm6, %v3992_v61  ;;  %v4002_v9 = vadd.f32 %v3970_v25, %v3777_v42  ;;  %v4003_v49 = vadd.f32 %v3971_v34, %v3778_v30 }
 0x559   :  { %4026 = vst.msk [vmem:[%s6393_s13 + $0x4c] sm:$0xf] %vm4006_vm6, %v3993_v63  ;;  %v4004_v43 = vadd.f32 %v3972_v27, %v3779_v38  ;;  %v4005_v48 = vadd.f32 %v3973_v57, %v3780_v54  ;;  %4027 = vst.msk [vmem:[%s6393_s13 + $0x50] sm:$0xf] %vm4006_vm6, %v3994_v59 }
 0x55a   :  { %4028 = vst.msk [vmem:[%s6393_s13 + $0x54] sm:$0xf] %vm4006_vm6, %v3995_v16  ;;  %4029 = vst.msk [vmem:[%s6393_s13 + $0x58] sm:$0xf] %vm4006_vm6, %v3996_v55 }
 0x55b   :  { %4030 = vst.msk [vmem:[%s6393_s13 + $0x5c] sm:$0xf] %vm4006_vm6, %v3997_v41  ;;  %4031 = vst.msk [vmem:[%s6393_s13 + $0x60] sm:$0xf] %vm4006_vm6, %v3998_v56 }
 0x55c   :  { %4032 = vst.msk [vmem:[%s6393_s13 + $0x64] sm:$0xf] %vm4006_vm6, %v3999_v50  ;;  %4033 = vst.msk [vmem:[%s6393_s13 + $0x68] sm:$0xf] %vm4006_vm6, %v4000_v7 }
 0x55d   :  { %4034 = vst.msk [vmem:[%s6393_s13 + $0x6c] sm:$0xf] %vm4006_vm6, %v4001_v32  ;;  %4035 = vst.msk [vmem:[%s6393_s13 + $0x70] sm:$0xf] %vm4006_vm6, %v4002_v9 }
 0x55e   :  { %4036 = vst.msk [vmem:[%s6393_s13 + $0x74] sm:$0xf] %vm4006_vm6, %v4003_v49  ;;  %4037 = vst.msk [vmem:[%s6393_s13 + $0x78] sm:$0xf] %vm4006_vm6, %v4004_v43 }
 0x55f   :  { %4038 = vst.msk [vmem:[%s6393_s13 + $0x7c] sm:$0xf] %vm4006_vm6, %v4005_v48 }

</bundles_post_ra>
